<compile_context>
chip_gen: v7x
topology: tpu7x:2x2x1
jax: 0.10.0
libtpu: 0.0.40
codegen_flags: <defaults>
</compile_context>

<pallas_src>
import math

import jax
import jax.numpy as jnp
from jax.experimental import pallas as pl
from jax.experimental.pallas import tpu as pltpu

# ----------------------- small synthetic BERT config -----------------------
VOCAB = 100
TYPE_VOCAB = 2
MAX_POS = 16
HIDDEN = 32
N_HEADS = 4
HEAD_DIM = HIDDEN // N_HEADS
N_LAYERS = 2
INTERMEDIATE = 64
CLASSES = 10
BATCH = 2
SEQ = 8
LN_EPS = 1e-12


# --------------------------- in-kernel helpers ------------------------------
def _mxu(a, w):
    # bf16 MXU operands (weights already stored bf16), f32 accumulation.
    return jnp.dot(a.astype(jnp.bfloat16), w, preferred_element_type=jnp.float32)


def _layernorm(h, g, b):
    mu = jnp.mean(h, axis=-1, keepdims=True)
    var = jnp.mean((h - mu) * (h - mu), axis=-1, keepdims=True)
    return (h - mu) * jax.lax.rsqrt(var + LN_EPS) * g + b


def _gelu_tanh(y):
    # TODO(synk): HF BertModel default hidden_act='gelu' is the exact erf gelu;
    # the tanh approximation is kept (matches gelu_new / gelu_pytorch_tanh).
    c = math.sqrt(2.0 / math.pi)
    return 0.5 * y * (1.0 + jnp.tanh(c * (y + 0.044715 * y * y * y)))


# ------------------------ fully fused BERT kernel ----------------------------
def _bert_fused_kernel(emb_ref, bias_ref, emb_ln_g_ref, emb_ln_b_ref,
                       qkv_w_ref, qkv_b_ref, ao_w_ref, ao_b_ref,
                       ln1_g_ref, ln1_b_ref, i_w_ref, i_b_ref,
                       o_w_ref, o_b_ref, ln2_g_ref, ln2_b_ref,
                       pool_w_ref, pool_b_ref, fc_w_ref, fc_b_ref,
                       out_ref):
    # Embedding LayerNorm on the whole [B*S, D] slab.
    h = _layernorm(emb_ref[...], emb_ln_g_ref[...], emb_ln_b_ref[...])   # [BS, D] f32

    bias = bias_ref[...]                                  # [B, 1, S] additive mask bias
    scale = 1.0 / math.sqrt(HEAD_DIM)

    for li in range(N_LAYERS):                            # static unrolled layer loop
        # Fused QKV projection: one [BS, D] x [D, 3D] MXU op.
        qkv = _mxu(h, qkv_w_ref[li]) + qkv_b_ref[li]      # [BS, 3D] f32

        # Per-head attention, batched over the batch dim (one batch dim per dot).
        heads = []
        for hi in range(N_HEADS):
            lo = hi * HEAD_DIM
            q3 = qkv[:, lo:lo + HEAD_DIM].reshape(
                BATCH, SEQ, HEAD_DIM).astype(jnp.bfloat16)
            k3 = qkv[:, HIDDEN + lo:HIDDEN + lo + HEAD_DIM].reshape(
                BATCH, SEQ, HEAD_DIM).astype(jnp.bfloat16)
            v3 = qkv[:, 2 * HIDDEN + lo:2 * HIDDEN + lo + HEAD_DIM].reshape(
                BATCH, SEQ, HEAD_DIM).astype(jnp.bfloat16)

            s = jnp.einsum('bqd,bkd->bqk', q3, k3,
                           preferred_element_type=jnp.float32) * scale   # [B, S, S]
            s = s + bias
            s = s - jnp.max(s, axis=-1, keepdims=True)
            p = jnp.exp(s)
            p = p / jnp.sum(p, axis=-1, keepdims=True)                   # exact softmax
            c3 = jnp.einsum('bqk,bkd->bqd', p.astype(jnp.bfloat16), v3,
                            preferred_element_type=jnp.float32)          # [B, S, Dh]
            heads.append(c3.reshape(BATCH * SEQ, HEAD_DIM))

        ctx = jnp.concatenate(heads, axis=-1)             # [BS, D] (registers only)

        attn = _mxu(ctx, ao_w_ref[li]) + ao_b_ref[li]
        h1 = _layernorm(attn + h, ln1_g_ref[li], ln1_b_ref[li])

        inter = _gelu_tanh(_mxu(h1, i_w_ref[li]) + i_b_ref[li])
        ffn = _mxu(inter, o_w_ref[li]) + o_b_ref[li]
        h = _layernorm(ffn + h1, ln2_g_ref[li], ln2_b_ref[li])

    # Pooler (tanh dense on CLS token) + classifier, fused in the same kernel.
    cls = jnp.concatenate([h[b * SEQ:b * SEQ + 1, :] for b in range(BATCH)], axis=0)
    pooled = jnp.tanh(_mxu(cls, pool_w_ref[...]) + pool_b_ref[...])      # [B, D]
    out_ref[...] = (_mxu(pooled, fc_w_ref[...]) + fc_b_ref[...]).astype(out_ref.dtype)


def _model_cost():
    m = BATCH * SEQ
    per_layer = (2 * m * HIDDEN * 3 * HIDDEN
                 + 4 * BATCH * N_HEADS * SEQ * SEQ * HEAD_DIM
                 + 2 * m * HIDDEN * HIDDEN
                 + 2 * m * HIDDEN * INTERMEDIATE
                 + 2 * m * INTERMEDIATE * HIDDEN)
    flops = (N_LAYERS * per_layer
             + 2 * BATCH * HIDDEN * HIDDEN + 2 * BATCH * HIDDEN * CLASSES)
    transcendentals = (N_LAYERS * (BATCH * N_HEADS * SEQ * SEQ
                                   + m * INTERMEDIATE + 2 * m)
                       + BATCH * HIDDEN + m)
    weight_bytes = 2 * (N_LAYERS * (HIDDEN * 3 * HIDDEN + HIDDEN * HIDDEN
                                    + HIDDEN * INTERMEDIATE + INTERMEDIATE * HIDDEN)
                        + HIDDEN * HIDDEN + HIDDEN * CLASSES)
    other_bytes = 4 * (m * HIDDEN + BATCH * SEQ + BATCH * CLASSES
                       + N_LAYERS * (3 * HIDDEN + 6 * HIDDEN + INTERMEDIATE)
                       + 3 * HIDDEN + CLASSES)
    return pl.CostEstimate(flops=flops, transcendentals=transcendentals,
                           bytes_accessed=weight_bytes + other_bytes)


def _full_spec(shape):
    ndim = len(shape)
    return pl.BlockSpec(tuple(shape), lambda i, _n=ndim: (0,) * _n)


# ------------------------------ parameters ----------------------------------
def init_params(key):
    def dense(k, fan_in, fan_out):
        # Weights pre-cast to bf16 (halves weight DMA; f32 accumulate in-kernel).
        return (jax.random.normal(k, (fan_in, fan_out), jnp.float32) * 0.02
                ).astype(jnp.bfloat16)

    keys = jax.random.split(key, 5 + N_LAYERS)
    p = {
        "word_emb": jax.random.normal(keys[0], (VOCAB, HIDDEN), jnp.float32) * 0.02,
        "pos_emb": jax.random.normal(keys[1], (MAX_POS, HIDDEN), jnp.float32) * 0.02,
        "type_emb": jax.random.normal(keys[2], (TYPE_VOCAB, HIDDEN), jnp.float32) * 0.02,
        "emb_ln_g": jnp.ones((1, HIDDEN), jnp.float32),
        "emb_ln_b": jnp.zeros((1, HIDDEN), jnp.float32),
        "pool_w": dense(keys[3], HIDDEN, HIDDEN),
        "pool_b": jnp.zeros((1, HIDDEN), jnp.float32),
        "fc_w": dense(keys[4], HIDDEN, CLASSES),
        "fc_b": jnp.zeros((1, CLASSES), jnp.float32),
    }
    qkv_w, ao_w, i_w, o_w = [], [], [], []
    for li in range(N_LAYERS):
        lk = jax.random.split(keys[5 + li], 6)
        qkv_w.append(jnp.concatenate([dense(lk[0], HIDDEN, HIDDEN),
                                      dense(lk[1], HIDDEN, HIDDEN),
                                      dense(lk[2], HIDDEN, HIDDEN)], axis=1))
        ao_w.append(dense(lk[3], HIDDEN, HIDDEN))
        i_w.append(dense(lk[4], HIDDEN, INTERMEDIATE))
        o_w.append(dense(lk[5], INTERMEDIATE, HIDDEN))
    p["layers"] = {
        "qkv_w": jnp.stack(qkv_w),                                        # [L, D, 3D] bf16
        "qkv_b": jnp.zeros((N_LAYERS, 1, 3 * HIDDEN), jnp.float32),
        "ao_w": jnp.stack(ao_w),                                          # [L, D, D]  bf16
        "ao_b": jnp.zeros((N_LAYERS, 1, HIDDEN), jnp.float32),
        "ln1_g": jnp.ones((N_LAYERS, 1, HIDDEN), jnp.float32),
        "ln1_b": jnp.zeros((N_LAYERS, 1, HIDDEN), jnp.float32),
        "i_w": jnp.stack(i_w),                                            # [L, D, I]  bf16
        "i_b": jnp.zeros((N_LAYERS, 1, INTERMEDIATE), jnp.float32),
        "o_w": jnp.stack(o_w),                                            # [L, I, D]  bf16
        "o_b": jnp.zeros((N_LAYERS, 1, HIDDEN), jnp.float32),
        "ln2_g": jnp.ones((N_LAYERS, 1, HIDDEN), jnp.float32),
        "ln2_b": jnp.zeros((N_LAYERS, 1, HIDDEN), jnp.float32),
    }
    return p


# ------------------------------- forward ------------------------------------
def bert_nn_forward(params, input_ids, attention_mask, token_type_ids):
    batch, seq = input_ids.shape
    # TODO(synk): embedding-table gathers are data-dependent; kept as JAX glue.
    word = jnp.take(params["word_emb"], input_ids, axis=0)
    pos = jnp.take(params["pos_emb"], jnp.arange(seq), axis=0)[None, :, :]
    tok = jnp.take(params["type_emb"], token_type_ids, axis=0)
    emb = (word + pos + tok).astype(jnp.float32).reshape(batch * seq, HIDDEN)

    # Additive attention-mask bias, precomputed once (tiny [B, 1, S] array).
    bias = (1.0 - attention_mask.astype(jnp.float32)).reshape(batch, 1, seq) * -10000.0

    L = params["layers"]
    args = (emb, bias, params["emb_ln_g"], params["emb_ln_b"],
            L["qkv_w"], L["qkv_b"], L["ao_w"], L["ao_b"],
            L["ln1_g"], L["ln1_b"], L["i_w"], L["i_b"],
            L["o_w"], L["o_b"], L["ln2_g"], L["ln2_b"],
            params["pool_w"], params["pool_b"], params["fc_w"], params["fc_b"])

    return pl.pallas_call(
        _bert_fused_kernel,
        out_shape=jax.ShapeDtypeStruct((BATCH, CLASSES), jnp.float32),
        grid=(1,),
        in_specs=[_full_spec(a.shape) for a in args],
        out_specs=pl.BlockSpec((BATCH, CLASSES), lambda i: (0, 0)),
        compiler_params=pltpu.CompilerParams(dimension_semantics=("arbitrary",)),
        cost_estimate=_model_cost(),
    )(*args)


# --------------------------------- main --------------------------------------
if __name__ == "__main__":
    key = jax.random.PRNGKey(0)
    pkey, ikey = jax.random.split(key)
    params = init_params(pkey)

    input_ids = jax.random.randint(ikey, (BATCH, SEQ), 0, VOCAB, dtype=jnp.int32)
    attention_mask = jnp.ones((BATCH, SEQ), jnp.int32)
    token_type_ids = jnp.zeros((BATCH, SEQ), jnp.int32)

    fwd = jax.jit(bert_nn_forward)
    logits = fwd(params, input_ids, attention_mask, token_type_ids)
    logits = jax.block_until_ready(logits)
    assert logits.shape == (BATCH, CLASSES)
    assert bool(jnp.all(jnp.isfinite(logits)))
    print("KERNEL_OK")
</pallas_src>

<mosaic_0001>
module attributes {stable_mosaic.version = 11 : i64} {
  func.func @_bert_fused_kernel(%arg0: i32, %arg1: memref<16x32xf32, #tpu.memory_space<vmem>>, %arg2: memref<2x1x8xf32, #tpu.memory_space<vmem>>, %arg3: memref<1x32xf32, #tpu.memory_space<vmem>>, %arg4: memref<1x32xf32, #tpu.memory_space<vmem>>, %arg5: memref<2x32x96xbf16, #tpu.memory_space<vmem>>, %arg6: memref<2x1x96xf32, #tpu.memory_space<vmem>>, %arg7: memref<2x32x32xbf16, #tpu.memory_space<vmem>>, %arg8: memref<2x1x32xf32, #tpu.memory_space<vmem>>, %arg9: memref<2x1x32xf32, #tpu.memory_space<vmem>>, %arg10: memref<2x1x32xf32, #tpu.memory_space<vmem>>, %arg11: memref<2x32x64xbf16, #tpu.memory_space<vmem>>, %arg12: memref<2x1x64xf32, #tpu.memory_space<vmem>>, %arg13: memref<2x64x32xbf16, #tpu.memory_space<vmem>>, %arg14: memref<2x1x32xf32, #tpu.memory_space<vmem>>, %arg15: memref<2x1x32xf32, #tpu.memory_space<vmem>>, %arg16: memref<2x1x32xf32, #tpu.memory_space<vmem>>, %arg17: memref<32x32xbf16, #tpu.memory_space<vmem>>, %arg18: memref<1x32xf32, #tpu.memory_space<vmem>>, %arg19: memref<32x10xbf16, #tpu.memory_space<vmem>>, %arg20: memref<1x10xf32, #tpu.memory_space<vmem>>, %arg21: memref<2x10xf32, #tpu.memory_space<vmem>>) attributes {dimension_semantics = [#tpu.dimension_semantics<arbitrary>], iteration_bounds = array<i64: 1>, scalar_prefetch = 0 : i64, scratch_operands = 0 : i64, tpu.core_type = #tpu.core_type<tc>, window_params = [{pipeline_mode = #tpu.pipeline_mode<synchronous>, transform_indices = @transform_0, window_bounds = array<i64: 16, 32>}, {pipeline_mode = #tpu.pipeline_mode<synchronous>, transform_indices = @transform_1, window_bounds = array<i64: 2, 1, 8>}, {pipeline_mode = #tpu.pipeline_mode<synchronous>, transform_indices = @transform_2, window_bounds = array<i64: 1, 32>}, {pipeline_mode = #tpu.pipeline_mode<synchronous>, transform_indices = @transform_3, window_bounds = array<i64: 1, 32>}, {pipeline_mode = #tpu.pipeline_mode<synchronous>, transform_indices = @transform_4, window_bounds = array<i64: 2, 32, 96>}, {pipeline_mode = #tpu.pipeline_mode<synchronous>, transform_indices = @transform_5, window_bounds = array<i64: 2, 1, 96>}, {pipeline_mode = #tpu.pipeline_mode<synchronous>, transform_indices = @transform_6, window_bounds = array<i64: 2, 32, 32>}, {pipeline_mode = #tpu.pipeline_mode<synchronous>, transform_indices = @transform_7, window_bounds = array<i64: 2, 1, 32>}, {pipeline_mode = #tpu.pipeline_mode<synchronous>, transform_indices = @transform_8, window_bounds = array<i64: 2, 1, 32>}, {pipeline_mode = #tpu.pipeline_mode<synchronous>, transform_indices = @transform_9, window_bounds = array<i64: 2, 1, 32>}, {pipeline_mode = #tpu.pipeline_mode<synchronous>, transform_indices = @transform_10, window_bounds = array<i64: 2, 32, 64>}, {pipeline_mode = #tpu.pipeline_mode<synchronous>, transform_indices = @transform_11, window_bounds = array<i64: 2, 1, 64>}, {pipeline_mode = #tpu.pipeline_mode<synchronous>, transform_indices = @transform_12, window_bounds = array<i64: 2, 64, 32>}, {pipeline_mode = #tpu.pipeline_mode<synchronous>, transform_indices = @transform_13, window_bounds = array<i64: 2, 1, 32>}, {pipeline_mode = #tpu.pipeline_mode<synchronous>, transform_indices = @transform_14, window_bounds = array<i64: 2, 1, 32>}, {pipeline_mode = #tpu.pipeline_mode<synchronous>, transform_indices = @transform_15, window_bounds = array<i64: 2, 1, 32>}, {pipeline_mode = #tpu.pipeline_mode<synchronous>, transform_indices = @transform_16, window_bounds = array<i64: 32, 32>}, {pipeline_mode = #tpu.pipeline_mode<synchronous>, transform_indices = @transform_17, window_bounds = array<i64: 1, 32>}, {pipeline_mode = #tpu.pipeline_mode<synchronous>, transform_indices = @transform_18, window_bounds = array<i64: 32, 10>}, {pipeline_mode = #tpu.pipeline_mode<synchronous>, transform_indices = @transform_19, window_bounds = array<i64: 1, 10>}, {pipeline_mode = #tpu.pipeline_mode<synchronous>, transform_indices = @transform_20, window_bounds = array<i64: 2, 10>}]} {
    %c0 = arith.constant 0 : index
    %c0_0 = arith.constant 0 : index
    %0 = vector.load %arg1[%c0, %c0_0] : memref<16x32xf32, #tpu.memory_space<vmem>>, vector<16x32xf32>
    %c0_1 = arith.constant 0 : index
    %c0_2 = arith.constant 0 : index
    %1 = vector.load %arg3[%c0_1, %c0_2] : memref<1x32xf32, #tpu.memory_space<vmem>>, vector<1x32xf32>
    %c0_3 = arith.constant 0 : index
    %c0_4 = arith.constant 0 : index
    %2 = vector.load %arg4[%c0_3, %c0_4] : memref<1x32xf32, #tpu.memory_space<vmem>>, vector<1x32xf32>
    %cst = arith.constant dense<0.000000e+00> : vector<16xf32>
    %3 = vector.multi_reduction <add>, %0, %cst [1] : vector<16x32xf32> to vector<16xf32>
    %4 = vector.shape_cast %3 : vector<16xf32> to vector<16x1xf32>
    %cst_5 = arith.constant 3.200000e+01 : f32
    %5 = vector.broadcast %cst_5 : f32 to vector<16x1xf32>
    %6 = arith.divf %4, %5 : vector<16x1xf32>
    %7 = vector.broadcast %6 : vector<16x1xf32> to vector<16x32xf32>
    %8 = arith.subf %0, %7 : vector<16x32xf32>
    %9 = vector.broadcast %6 : vector<16x1xf32> to vector<16x32xf32>
    %10 = arith.subf %0, %9 : vector<16x32xf32>
    %11 = arith.mulf %8, %10 : vector<16x32xf32>
    %cst_6 = arith.constant dense<0.000000e+00> : vector<16xf32>
    %12 = vector.multi_reduction <add>, %11, %cst_6 [1] : vector<16x32xf32> to vector<16xf32>
    %13 = vector.shape_cast %12 : vector<16xf32> to vector<16x1xf32>
    %cst_7 = arith.constant 3.200000e+01 : f32
    %14 = vector.broadcast %cst_7 : f32 to vector<16x1xf32>
    %15 = arith.divf %13, %14 : vector<16x1xf32>
    %16 = vector.broadcast %6 : vector<16x1xf32> to vector<16x32xf32>
    %17 = arith.subf %0, %16 : vector<16x32xf32>
    %cst_8 = arith.constant 9.99999996E-13 : f32
    %18 = vector.broadcast %cst_8 : f32 to vector<16x1xf32>
    %19 = arith.addf %15, %18 : vector<16x1xf32>
    %20 = math.rsqrt %19 : vector<16x1xf32>
    %21 = vector.broadcast %20 : vector<16x1xf32> to vector<16x32xf32>
    %22 = arith.mulf %17, %21 : vector<16x32xf32>
    %23 = vector.broadcast %1 : vector<1x32xf32> to vector<16x32xf32>
    %24 = arith.mulf %22, %23 : vector<16x32xf32>
    %25 = vector.broadcast %2 : vector<1x32xf32> to vector<16x32xf32>
    %26 = arith.addf %24, %25 : vector<16x32xf32>
    %c0_9 = arith.constant 0 : index
    %c0_10 = arith.constant 0 : index
    %c0_11 = arith.constant 0 : index
    %27 = vector.load %arg2[%c0_9, %c0_10, %c0_11] : memref<2x1x8xf32, #tpu.memory_space<vmem>>, vector<2x1x8xf32>
    %c0_12 = arith.constant 0 : index
    %c0_13 = arith.constant 0 : index
    %c0_14 = arith.constant 0 : index
    %28 = vector.load %arg5[%c0_12, %c0_13, %c0_14] : memref<2x32x96xbf16, #tpu.memory_space<vmem>>, vector<1x32x96xbf16>
    %29 = vector.shape_cast %28 : vector<1x32x96xbf16> to vector<32x96xbf16>
    %30 = arith.truncf %26 : vector<16x32xf32> to vector<16x32xbf16>
    %cst_15 = arith.constant dense<0.000000e+00> : vector<16x96xf32>
    %31 = tpu.matmul %30, %29, %cst_15 {dimension_numbers = #tpu.dot_dimension_numbers<[1], [0], [0], [1], [0, 0, 1, 1], [], []>} : vector<16x32xbf16>, vector<32x96xbf16>, vector<16x96xf32> -> vector<16x96xf32>
    %c0_16 = arith.constant 0 : index
    %c0_17 = arith.constant 0 : index
    %c0_18 = arith.constant 0 : index
    %32 = vector.load %arg6[%c0_16, %c0_17, %c0_18] : memref<2x1x96xf32, #tpu.memory_space<vmem>>, vector<1x1x96xf32>
    %33 = vector.shape_cast %32 : vector<1x1x96xf32> to vector<1x96xf32>
    %34 = vector.broadcast %33 : vector<1x96xf32> to vector<16x96xf32>
    %35 = arith.addf %31, %34 : vector<16x96xf32>
    %36 = vector.extract_strided_slice %35 {offsets = [0, 0], sizes = [16, 8], strides = [1, 1]} : vector<16x96xf32> to vector<16x8xf32>
    %37 = vector.shape_cast %36 : vector<16x8xf32> to vector<2x8x8xf32>
    %38 = arith.truncf %37 : vector<2x8x8xf32> to vector<2x8x8xbf16>
    %39 = vector.extract_strided_slice %35 {offsets = [0, 32], sizes = [16, 8], strides = [1, 1]} : vector<16x96xf32> to vector<16x8xf32>
    %40 = vector.shape_cast %39 : vector<16x8xf32> to vector<2x8x8xf32>
    %41 = arith.truncf %40 : vector<2x8x8xf32> to vector<2x8x8xbf16>
    %42 = vector.extract_strided_slice %35 {offsets = [0, 64], sizes = [16, 8], strides = [1, 1]} : vector<16x96xf32> to vector<16x8xf32>
    %43 = vector.shape_cast %42 : vector<16x8xf32> to vector<2x8x8xf32>
    %44 = arith.truncf %43 : vector<2x8x8xf32> to vector<2x8x8xbf16>
    "tpu.trace_start"() <{level = 10 : i32, message = "bqd,bkd->bqk"}> : () -> ()
    %cst_19 = arith.constant dense<0.000000e+00> : vector<2x8x8xf32>
    %45 = tpu.matmul %38, %41, %cst_19 {dimension_numbers = #tpu.dot_dimension_numbers<[2], [2], [1], [1], [0, 0, 0, 1, 1, 1], [0], [0]>} : vector<2x8x8xbf16>, vector<2x8x8xbf16>, vector<2x8x8xf32> -> vector<2x8x8xf32>
    "tpu.trace_stop"() : () -> ()
    %cst_20 = arith.constant 0.353553385 : f32
    %46 = vector.broadcast %cst_20 : f32 to vector<2x8x8xf32>
    %47 = arith.mulf %45, %46 : vector<2x8x8xf32>
    %48 = vector.broadcast %27 : vector<2x1x8xf32> to vector<2x8x8xf32>
    %49 = arith.addf %47, %48 : vector<2x8x8xf32>
    %cst_21 = arith.constant dense<0xFF800000> : vector<2x8xf32>
    %50 = vector.multi_reduction <maximumf>, %49, %cst_21 [2] : vector<2x8x8xf32> to vector<2x8xf32>
    %51 = vector.shape_cast %50 : vector<2x8xf32> to vector<2x8x1xf32>
    %52 = vector.broadcast %51 : vector<2x8x1xf32> to vector<2x8x8xf32>
    %53 = arith.subf %49, %52 : vector<2x8x8xf32>
    %54 = math.exp %53 : vector<2x8x8xf32>
    %cst_22 = arith.constant dense<0.000000e+00> : vector<2x8xf32>
    %55 = vector.multi_reduction <add>, %54, %cst_22 [2] : vector<2x8x8xf32> to vector<2x8xf32>
    %56 = vector.shape_cast %55 : vector<2x8xf32> to vector<2x8x1xf32>
    %57 = vector.broadcast %56 : vector<2x8x1xf32> to vector<2x8x8xf32>
    %58 = arith.divf %54, %57 : vector<2x8x8xf32>
    %59 = arith.truncf %58 : vector<2x8x8xf32> to vector<2x8x8xbf16>
    "tpu.trace_start"() <{level = 10 : i32, message = "bqk,bkd->bqd"}> : () -> ()
    %cst_23 = arith.constant dense<0.000000e+00> : vector<2x8x8xf32>
    %60 = tpu.matmul %59, %44, %cst_23 {dimension_numbers = #tpu.dot_dimension_numbers<[2], [1], [1], [2], [0, 0, 0, 1, 1, 2], [0], [0]>} : vector<2x8x8xbf16>, vector<2x8x8xbf16>, vector<2x8x8xf32> -> vector<2x8x8xf32>
    "tpu.trace_stop"() : () -> ()
    %61 = vector.shape_cast %60 : vector<2x8x8xf32> to vector<16x8xf32>
    %62 = vector.extract_strided_slice %35 {offsets = [0, 8], sizes = [16, 8], strides = [1, 1]} : vector<16x96xf32> to vector<16x8xf32>
    %63 = vector.shape_cast %62 : vector<16x8xf32> to vector<2x8x8xf32>
    %64 = arith.truncf %63 : vector<2x8x8xf32> to vector<2x8x8xbf16>
    %65 = vector.extract_strided_slice %35 {offsets = [0, 40], sizes = [16, 8], strides = [1, 1]} : vector<16x96xf32> to vector<16x8xf32>
    %66 = vector.shape_cast %65 : vector<16x8xf32> to vector<2x8x8xf32>
    %67 = arith.truncf %66 : vector<2x8x8xf32> to vector<2x8x8xbf16>
    %68 = vector.extract_strided_slice %35 {offsets = [0, 72], sizes = [16, 8], strides = [1, 1]} : vector<16x96xf32> to vector<16x8xf32>
    %69 = vector.shape_cast %68 : vector<16x8xf32> to vector<2x8x8xf32>
    %70 = arith.truncf %69 : vector<2x8x8xf32> to vector<2x8x8xbf16>
    "tpu.trace_start"() <{level = 10 : i32, message = "bqd,bkd->bqk"}> : () -> ()
    %cst_24 = arith.constant dense<0.000000e+00> : vector<2x8x8xf32>
    %71 = tpu.matmul %64, %67, %cst_24 {dimension_numbers = #tpu.dot_dimension_numbers<[2], [2], [1], [1], [0, 0, 0, 1, 1, 1], [0], [0]>} : vector<2x8x8xbf16>, vector<2x8x8xbf16>, vector<2x8x8xf32> -> vector<2x8x8xf32>
    "tpu.trace_stop"() : () -> ()
    %cst_25 = arith.constant 0.353553385 : f32
    %72 = vector.broadcast %cst_25 : f32 to vector<2x8x8xf32>
    %73 = arith.mulf %71, %72 : vector<2x8x8xf32>
    %74 = vector.broadcast %27 : vector<2x1x8xf32> to vector<2x8x8xf32>
    %75 = arith.addf %73, %74 : vector<2x8x8xf32>
    %cst_26 = arith.constant dense<0xFF800000> : vector<2x8xf32>
    %76 = vector.multi_reduction <maximumf>, %75, %cst_26 [2] : vector<2x8x8xf32> to vector<2x8xf32>
    %77 = vector.shape_cast %76 : vector<2x8xf32> to vector<2x8x1xf32>
    %78 = vector.broadcast %77 : vector<2x8x1xf32> to vector<2x8x8xf32>
    %79 = arith.subf %75, %78 : vector<2x8x8xf32>
    %80 = math.exp %79 : vector<2x8x8xf32>
    %cst_27 = arith.constant dense<0.000000e+00> : vector<2x8xf32>
    %81 = vector.multi_reduction <add>, %80, %cst_27 [2] : vector<2x8x8xf32> to vector<2x8xf32>
    %82 = vector.shape_cast %81 : vector<2x8xf32> to vector<2x8x1xf32>
    %83 = vector.broadcast %82 : vector<2x8x1xf32> to vector<2x8x8xf32>
    %84 = arith.divf %80, %83 : vector<2x8x8xf32>
    %85 = arith.truncf %84 : vector<2x8x8xf32> to vector<2x8x8xbf16>
    "tpu.trace_start"() <{level = 10 : i32, message = "bqk,bkd->bqd"}> : () -> ()
    %cst_28 = arith.constant dense<0.000000e+00> : vector<2x8x8xf32>
    %86 = tpu.matmul %85, %70, %cst_28 {dimension_numbers = #tpu.dot_dimension_numbers<[2], [1], [1], [2], [0, 0, 0, 1, 1, 2], [0], [0]>} : vector<2x8x8xbf16>, vector<2x8x8xbf16>, vector<2x8x8xf32> -> vector<2x8x8xf32>
    "tpu.trace_stop"() : () -> ()
    %87 = vector.shape_cast %86 : vector<2x8x8xf32> to vector<16x8xf32>
    %88 = vector.extract_strided_slice %35 {offsets = [0, 16], sizes = [16, 8], strides = [1, 1]} : vector<16x96xf32> to vector<16x8xf32>
    %89 = vector.shape_cast %88 : vector<16x8xf32> to vector<2x8x8xf32>
    %90 = arith.truncf %89 : vector<2x8x8xf32> to vector<2x8x8xbf16>
    %91 = vector.extract_strided_slice %35 {offsets = [0, 48], sizes = [16, 8], strides = [1, 1]} : vector<16x96xf32> to vector<16x8xf32>
    %92 = vector.shape_cast %91 : vector<16x8xf32> to vector<2x8x8xf32>
    %93 = arith.truncf %92 : vector<2x8x8xf32> to vector<2x8x8xbf16>
    %94 = vector.extract_strided_slice %35 {offsets = [0, 80], sizes = [16, 8], strides = [1, 1]} : vector<16x96xf32> to vector<16x8xf32>
    %95 = vector.shape_cast %94 : vector<16x8xf32> to vector<2x8x8xf32>
    %96 = arith.truncf %95 : vector<2x8x8xf32> to vector<2x8x8xbf16>
    "tpu.trace_start"() <{level = 10 : i32, message = "bqd,bkd->bqk"}> : () -> ()
    %cst_29 = arith.constant dense<0.000000e+00> : vector<2x8x8xf32>
    %97 = tpu.matmul %90, %93, %cst_29 {dimension_numbers = #tpu.dot_dimension_numbers<[2], [2], [1], [1], [0, 0, 0, 1, 1, 1], [0], [0]>} : vector<2x8x8xbf16>, vector<2x8x8xbf16>, vector<2x8x8xf32> -> vector<2x8x8xf32>
    "tpu.trace_stop"() : () -> ()
    %cst_30 = arith.constant 0.353553385 : f32
    %98 = vector.broadcast %cst_30 : f32 to vector<2x8x8xf32>
    %99 = arith.mulf %97, %98 : vector<2x8x8xf32>
    %100 = vector.broadcast %27 : vector<2x1x8xf32> to vector<2x8x8xf32>
    %101 = arith.addf %99, %100 : vector<2x8x8xf32>
    %cst_31 = arith.constant dense<0xFF800000> : vector<2x8xf32>
    %102 = vector.multi_reduction <maximumf>, %101, %cst_31 [2] : vector<2x8x8xf32> to vector<2x8xf32>
    %103 = vector.shape_cast %102 : vector<2x8xf32> to vector<2x8x1xf32>
    %104 = vector.broadcast %103 : vector<2x8x1xf32> to vector<2x8x8xf32>
    %105 = arith.subf %101, %104 : vector<2x8x8xf32>
    %106 = math.exp %105 : vector<2x8x8xf32>
    %cst_32 = arith.constant dense<0.000000e+00> : vector<2x8xf32>
    %107 = vector.multi_reduction <add>, %106, %cst_32 [2] : vector<2x8x8xf32> to vector<2x8xf32>
    %108 = vector.shape_cast %107 : vector<2x8xf32> to vector<2x8x1xf32>
    %109 = vector.broadcast %108 : vector<2x8x1xf32> to vector<2x8x8xf32>
    %110 = arith.divf %106, %109 : vector<2x8x8xf32>
    %111 = arith.truncf %110 : vector<2x8x8xf32> to vector<2x8x8xbf16>
    "tpu.trace_start"() <{level = 10 : i32, message = "bqk,bkd->bqd"}> : () -> ()
    %cst_33 = arith.constant dense<0.000000e+00> : vector<2x8x8xf32>
    %112 = tpu.matmul %111, %96, %cst_33 {dimension_numbers = #tpu.dot_dimension_numbers<[2], [1], [1], [2], [0, 0, 0, 1, 1, 2], [0], [0]>} : vector<2x8x8xbf16>, vector<2x8x8xbf16>, vector<2x8x8xf32> -> vector<2x8x8xf32>
    "tpu.trace_stop"() : () -> ()
    %113 = vector.shape_cast %112 : vector<2x8x8xf32> to vector<16x8xf32>
    %114 = vector.extract_strided_slice %35 {offsets = [0, 24], sizes = [16, 8], strides = [1, 1]} : vector<16x96xf32> to vector<16x8xf32>
    %115 = vector.shape_cast %114 : vector<16x8xf32> to vector<2x8x8xf32>
    %116 = arith.truncf %115 : vector<2x8x8xf32> to vector<2x8x8xbf16>
    %117 = vector.extract_strided_slice %35 {offsets = [0, 56], sizes = [16, 8], strides = [1, 1]} : vector<16x96xf32> to vector<16x8xf32>
    %118 = vector.shape_cast %117 : vector<16x8xf32> to vector<2x8x8xf32>
    %119 = arith.truncf %118 : vector<2x8x8xf32> to vector<2x8x8xbf16>
    %120 = vector.extract_strided_slice %35 {offsets = [0, 88], sizes = [16, 8], strides = [1, 1]} : vector<16x96xf32> to vector<16x8xf32>
    %121 = vector.shape_cast %120 : vector<16x8xf32> to vector<2x8x8xf32>
    %122 = arith.truncf %121 : vector<2x8x8xf32> to vector<2x8x8xbf16>
    "tpu.trace_start"() <{level = 10 : i32, message = "bqd,bkd->bqk"}> : () -> ()
    %cst_34 = arith.constant dense<0.000000e+00> : vector<2x8x8xf32>
    %123 = tpu.matmul %116, %119, %cst_34 {dimension_numbers = #tpu.dot_dimension_numbers<[2], [2], [1], [1], [0, 0, 0, 1, 1, 1], [0], [0]>} : vector<2x8x8xbf16>, vector<2x8x8xbf16>, vector<2x8x8xf32> -> vector<2x8x8xf32>
    "tpu.trace_stop"() : () -> ()
    %cst_35 = arith.constant 0.353553385 : f32
    %124 = vector.broadcast %cst_35 : f32 to vector<2x8x8xf32>
    %125 = arith.mulf %123, %124 : vector<2x8x8xf32>
    %126 = vector.broadcast %27 : vector<2x1x8xf32> to vector<2x8x8xf32>
    %127 = arith.addf %125, %126 : vector<2x8x8xf32>
    %cst_36 = arith.constant dense<0xFF800000> : vector<2x8xf32>
    %128 = vector.multi_reduction <maximumf>, %127, %cst_36 [2] : vector<2x8x8xf32> to vector<2x8xf32>
    %129 = vector.shape_cast %128 : vector<2x8xf32> to vector<2x8x1xf32>
    %130 = vector.broadcast %129 : vector<2x8x1xf32> to vector<2x8x8xf32>
    %131 = arith.subf %127, %130 : vector<2x8x8xf32>
    %132 = math.exp %131 : vector<2x8x8xf32>
    %cst_37 = arith.constant dense<0.000000e+00> : vector<2x8xf32>
    %133 = vector.multi_reduction <add>, %132, %cst_37 [2] : vector<2x8x8xf32> to vector<2x8xf32>
    %134 = vector.shape_cast %133 : vector<2x8xf32> to vector<2x8x1xf32>
    %135 = vector.broadcast %134 : vector<2x8x1xf32> to vector<2x8x8xf32>
    %136 = arith.divf %132, %135 : vector<2x8x8xf32>
    %137 = arith.truncf %136 : vector<2x8x8xf32> to vector<2x8x8xbf16>
    "tpu.trace_start"() <{level = 10 : i32, message = "bqk,bkd->bqd"}> : () -> ()
    %cst_38 = arith.constant dense<0.000000e+00> : vector<2x8x8xf32>
    %138 = tpu.matmul %137, %122, %cst_38 {dimension_numbers = #tpu.dot_dimension_numbers<[2], [1], [1], [2], [0, 0, 0, 1, 1, 2], [0], [0]>} : vector<2x8x8xbf16>, vector<2x8x8xbf16>, vector<2x8x8xf32> -> vector<2x8x8xf32>
    "tpu.trace_stop"() : () -> ()
    %139 = vector.shape_cast %138 : vector<2x8x8xf32> to vector<16x8xf32>
    %140 = tpu.concatenate %61, %87, %113, %139 in 1 : vector<16x8xf32>, vector<16x8xf32>, vector<16x8xf32>, vector<16x8xf32> -> vector<16x32xf32>
    %c0_39 = arith.constant 0 : index
    %c0_40 = arith.constant 0 : index
    %c0_41 = arith.constant 0 : index
    %141 = vector.load %arg7[%c0_39, %c0_40, %c0_41] : memref<2x32x32xbf16, #tpu.memory_space<vmem>>, vector<1x32x32xbf16>
    %142 = vector.shape_cast %141 : vector<1x32x32xbf16> to vector<32x32xbf16>
    %143 = arith.truncf %140 : vector<16x32xf32> to vector<16x32xbf16>
    %cst_42 = arith.constant dense<0.000000e+00> : vector<16x32xf32>
    %144 = tpu.matmul %143, %142, %cst_42 {dimension_numbers = #tpu.dot_dimension_numbers<[1], [0], [0], [1], [0, 0, 1, 1], [], []>} : vector<16x32xbf16>, vector<32x32xbf16>, vector<16x32xf32> -> vector<16x32xf32>
    %c0_43 = arith.constant 0 : index
    %c0_44 = arith.constant 0 : index
    %c0_45 = arith.constant 0 : index
    %145 = vector.load %arg8[%c0_43, %c0_44, %c0_45] : memref<2x1x32xf32, #tpu.memory_space<vmem>>, vector<1x1x32xf32>
    %146 = vector.shape_cast %145 : vector<1x1x32xf32> to vector<1x32xf32>
    %147 = vector.broadcast %146 : vector<1x32xf32> to vector<16x32xf32>
    %148 = arith.addf %144, %147 : vector<16x32xf32>
    %149 = arith.addf %148, %26 : vector<16x32xf32>
    %c0_46 = arith.constant 0 : index
    %c0_47 = arith.constant 0 : index
    %c0_48 = arith.constant 0 : index
    %150 = vector.load %arg9[%c0_46, %c0_47, %c0_48] : memref<2x1x32xf32, #tpu.memory_space<vmem>>, vector<1x1x32xf32>
    %151 = vector.shape_cast %150 : vector<1x1x32xf32> to vector<1x32xf32>
    %c0_49 = arith.constant 0 : index
    %c0_50 = arith.constant 0 : index
    %c0_51 = arith.constant 0 : index
    %152 = vector.load %arg10[%c0_49, %c0_50, %c0_51] : memref<2x1x32xf32, #tpu.memory_space<vmem>>, vector<1x1x32xf32>
    %153 = vector.shape_cast %152 : vector<1x1x32xf32> to vector<1x32xf32>
    %cst_52 = arith.constant dense<0.000000e+00> : vector<16xf32>
    %154 = vector.multi_reduction <add>, %149, %cst_52 [1] : vector<16x32xf32> to vector<16xf32>
    %155 = vector.shape_cast %154 : vector<16xf32> to vector<16x1xf32>
    %cst_53 = arith.constant 3.200000e+01 : f32
    %156 = vector.broadcast %cst_53 : f32 to vector<16x1xf32>
    %157 = arith.divf %155, %156 : vector<16x1xf32>
    %158 = vector.broadcast %157 : vector<16x1xf32> to vector<16x32xf32>
    %159 = arith.subf %149, %158 : vector<16x32xf32>
    %160 = vector.broadcast %157 : vector<16x1xf32> to vector<16x32xf32>
    %161 = arith.subf %149, %160 : vector<16x32xf32>
    %162 = arith.mulf %159, %161 : vector<16x32xf32>
    %cst_54 = arith.constant dense<0.000000e+00> : vector<16xf32>
    %163 = vector.multi_reduction <add>, %162, %cst_54 [1] : vector<16x32xf32> to vector<16xf32>
    %164 = vector.shape_cast %163 : vector<16xf32> to vector<16x1xf32>
    %cst_55 = arith.constant 3.200000e+01 : f32
    %165 = vector.broadcast %cst_55 : f32 to vector<16x1xf32>
    %166 = arith.divf %164, %165 : vector<16x1xf32>
    %167 = vector.broadcast %157 : vector<16x1xf32> to vector<16x32xf32>
    %168 = arith.subf %149, %167 : vector<16x32xf32>
    %cst_56 = arith.constant 9.99999996E-13 : f32
    %169 = vector.broadcast %cst_56 : f32 to vector<16x1xf32>
    %170 = arith.addf %166, %169 : vector<16x1xf32>
    %171 = math.rsqrt %170 : vector<16x1xf32>
    %172 = vector.broadcast %171 : vector<16x1xf32> to vector<16x32xf32>
    %173 = arith.mulf %168, %172 : vector<16x32xf32>
    %174 = vector.broadcast %151 : vector<1x32xf32> to vector<16x32xf32>
    %175 = arith.mulf %173, %174 : vector<16x32xf32>
    %176 = vector.broadcast %153 : vector<1x32xf32> to vector<16x32xf32>
    %177 = arith.addf %175, %176 : vector<16x32xf32>
    %c0_57 = arith.constant 0 : index
    %c0_58 = arith.constant 0 : index
    %c0_59 = arith.constant 0 : index
    %178 = vector.load %arg11[%c0_57, %c0_58, %c0_59] : memref<2x32x64xbf16, #tpu.memory_space<vmem>>, vector<1x32x64xbf16>
    %179 = vector.shape_cast %178 : vector<1x32x64xbf16> to vector<32x64xbf16>
    %180 = arith.truncf %177 : vector<16x32xf32> to vector<16x32xbf16>
    %cst_60 = arith.constant dense<0.000000e+00> : vector<16x64xf32>
    %181 = tpu.matmul %180, %179, %cst_60 {dimension_numbers = #tpu.dot_dimension_numbers<[1], [0], [0], [1], [0, 0, 1, 1], [], []>} : vector<16x32xbf16>, vector<32x64xbf16>, vector<16x64xf32> -> vector<16x64xf32>
    %c0_61 = arith.constant 0 : index
    %c0_62 = arith.constant 0 : index
    %c0_63 = arith.constant 0 : index
    %182 = vector.load %arg12[%c0_61, %c0_62, %c0_63] : memref<2x1x64xf32, #tpu.memory_space<vmem>>, vector<1x1x64xf32>
    %183 = vector.shape_cast %182 : vector<1x1x64xf32> to vector<1x64xf32>
    %184 = vector.broadcast %183 : vector<1x64xf32> to vector<16x64xf32>
    %185 = arith.addf %181, %184 : vector<16x64xf32>
    %cst_64 = arith.constant 5.000000e-01 : f32
    %186 = vector.broadcast %cst_64 : f32 to vector<16x64xf32>
    %187 = arith.mulf %186, %185 : vector<16x64xf32>
    %cst_65 = arith.constant 4.471500e-02 : f32
    %188 = vector.broadcast %cst_65 : f32 to vector<16x64xf32>
    %189 = arith.mulf %188, %185 : vector<16x64xf32>
    %190 = arith.mulf %189, %185 : vector<16x64xf32>
    %191 = arith.mulf %190, %185 : vector<16x64xf32>
    %192 = arith.addf %185, %191 : vector<16x64xf32>
    %cst_66 = arith.constant 0.797884583 : f32
    %193 = vector.broadcast %cst_66 : f32 to vector<16x64xf32>
    %194 = arith.mulf %193, %192 : vector<16x64xf32>
    %195 = math.tanh %194 : vector<16x64xf32>
    %cst_67 = arith.constant 1.000000e+00 : f32
    %196 = vector.broadcast %cst_67 : f32 to vector<16x64xf32>
    %197 = arith.addf %196, %195 : vector<16x64xf32>
    %198 = arith.mulf %187, %197 : vector<16x64xf32>
    %c0_68 = arith.constant 0 : index
    %c0_69 = arith.constant 0 : index
    %c0_70 = arith.constant 0 : index
    %199 = vector.load %arg13[%c0_68, %c0_69, %c0_70] : memref<2x64x32xbf16, #tpu.memory_space<vmem>>, vector<1x64x32xbf16>
    %200 = vector.shape_cast %199 : vector<1x64x32xbf16> to vector<64x32xbf16>
    %201 = arith.truncf %198 : vector<16x64xf32> to vector<16x64xbf16>
    %cst_71 = arith.constant dense<0.000000e+00> : vector<16x32xf32>
    %202 = tpu.matmul %201, %200, %cst_71 {dimension_numbers = #tpu.dot_dimension_numbers<[1], [0], [0], [1], [0, 0, 1, 1], [], []>} : vector<16x64xbf16>, vector<64x32xbf16>, vector<16x32xf32> -> vector<16x32xf32>
    %c0_72 = arith.constant 0 : index
    %c0_73 = arith.constant 0 : index
    %c0_74 = arith.constant 0 : index
    %203 = vector.load %arg14[%c0_72, %c0_73, %c0_74] : memref<2x1x32xf32, #tpu.memory_space<vmem>>, vector<1x1x32xf32>
    %204 = vector.shape_cast %203 : vector<1x1x32xf32> to vector<1x32xf32>
    %205 = vector.broadcast %204 : vector<1x32xf32> to vector<16x32xf32>
    %206 = arith.addf %202, %205 : vector<16x32xf32>
    %207 = arith.addf %206, %177 : vector<16x32xf32>
    %c0_75 = arith.constant 0 : index
    %c0_76 = arith.constant 0 : index
    %c0_77 = arith.constant 0 : index
    %208 = vector.load %arg15[%c0_75, %c0_76, %c0_77] : memref<2x1x32xf32, #tpu.memory_space<vmem>>, vector<1x1x32xf32>
    %209 = vector.shape_cast %208 : vector<1x1x32xf32> to vector<1x32xf32>
    %c0_78 = arith.constant 0 : index
    %c0_79 = arith.constant 0 : index
    %c0_80 = arith.constant 0 : index
    %210 = vector.load %arg16[%c0_78, %c0_79, %c0_80] : memref<2x1x32xf32, #tpu.memory_space<vmem>>, vector<1x1x32xf32>
    %211 = vector.shape_cast %210 : vector<1x1x32xf32> to vector<1x32xf32>
    %cst_81 = arith.constant dense<0.000000e+00> : vector<16xf32>
    %212 = vector.multi_reduction <add>, %207, %cst_81 [1] : vector<16x32xf32> to vector<16xf32>
    %213 = vector.shape_cast %212 : vector<16xf32> to vector<16x1xf32>
    %cst_82 = arith.constant 3.200000e+01 : f32
    %214 = vector.broadcast %cst_82 : f32 to vector<16x1xf32>
    %215 = arith.divf %213, %214 : vector<16x1xf32>
    %216 = vector.broadcast %215 : vector<16x1xf32> to vector<16x32xf32>
    %217 = arith.subf %207, %216 : vector<16x32xf32>
    %218 = vector.broadcast %215 : vector<16x1xf32> to vector<16x32xf32>
    %219 = arith.subf %207, %218 : vector<16x32xf32>
    %220 = arith.mulf %217, %219 : vector<16x32xf32>
    %cst_83 = arith.constant dense<0.000000e+00> : vector<16xf32>
    %221 = vector.multi_reduction <add>, %220, %cst_83 [1] : vector<16x32xf32> to vector<16xf32>
    %222 = vector.shape_cast %221 : vector<16xf32> to vector<16x1xf32>
    %cst_84 = arith.constant 3.200000e+01 : f32
    %223 = vector.broadcast %cst_84 : f32 to vector<16x1xf32>
    %224 = arith.divf %222, %223 : vector<16x1xf32>
    %225 = vector.broadcast %215 : vector<16x1xf32> to vector<16x32xf32>
    %226 = arith.subf %207, %225 : vector<16x32xf32>
    %cst_85 = arith.constant 9.99999996E-13 : f32
    %227 = vector.broadcast %cst_85 : f32 to vector<16x1xf32>
    %228 = arith.addf %224, %227 : vector<16x1xf32>
    %229 = math.rsqrt %228 : vector<16x1xf32>
    %230 = vector.broadcast %229 : vector<16x1xf32> to vector<16x32xf32>
    %231 = arith.mulf %226, %230 : vector<16x32xf32>
    %232 = vector.broadcast %209 : vector<1x32xf32> to vector<16x32xf32>
    %233 = arith.mulf %231, %232 : vector<16x32xf32>
    %234 = vector.broadcast %211 : vector<1x32xf32> to vector<16x32xf32>
    %235 = arith.addf %233, %234 : vector<16x32xf32>
    %c1 = arith.constant 1 : index
    %c0_86 = arith.constant 0 : index
    %c0_87 = arith.constant 0 : index
    %236 = vector.load %arg5[%c1, %c0_86, %c0_87] : memref<2x32x96xbf16, #tpu.memory_space<vmem>>, vector<1x32x96xbf16>
    %237 = vector.shape_cast %236 : vector<1x32x96xbf16> to vector<32x96xbf16>
    %238 = arith.truncf %235 : vector<16x32xf32> to vector<16x32xbf16>
    %cst_88 = arith.constant dense<0.000000e+00> : vector<16x96xf32>
    %239 = tpu.matmul %238, %237, %cst_88 {dimension_numbers = #tpu.dot_dimension_numbers<[1], [0], [0], [1], [0, 0, 1, 1], [], []>} : vector<16x32xbf16>, vector<32x96xbf16>, vector<16x96xf32> -> vector<16x96xf32>
    %c1_89 = arith.constant 1 : index
    %c0_90 = arith.constant 0 : index
    %c0_91 = arith.constant 0 : index
    %240 = vector.load %arg6[%c1_89, %c0_90, %c0_91] : memref<2x1x96xf32, #tpu.memory_space<vmem>>, vector<1x1x96xf32>
    %241 = vector.shape_cast %240 : vector<1x1x96xf32> to vector<1x96xf32>
    %242 = vector.broadcast %241 : vector<1x96xf32> to vector<16x96xf32>
    %243 = arith.addf %239, %242 : vector<16x96xf32>
    %244 = vector.extract_strided_slice %243 {offsets = [0, 0], sizes = [16, 8], strides = [1, 1]} : vector<16x96xf32> to vector<16x8xf32>
    %245 = vector.shape_cast %244 : vector<16x8xf32> to vector<2x8x8xf32>
    %246 = arith.truncf %245 : vector<2x8x8xf32> to vector<2x8x8xbf16>
    %247 = vector.extract_strided_slice %243 {offsets = [0, 32], sizes = [16, 8], strides = [1, 1]} : vector<16x96xf32> to vector<16x8xf32>
    %248 = vector.shape_cast %247 : vector<16x8xf32> to vector<2x8x8xf32>
    %249 = arith.truncf %248 : vector<2x8x8xf32> to vector<2x8x8xbf16>
    %250 = vector.extract_strided_slice %243 {offsets = [0, 64], sizes = [16, 8], strides = [1, 1]} : vector<16x96xf32> to vector<16x8xf32>
    %251 = vector.shape_cast %250 : vector<16x8xf32> to vector<2x8x8xf32>
    %252 = arith.truncf %251 : vector<2x8x8xf32> to vector<2x8x8xbf16>
    "tpu.trace_start"() <{level = 10 : i32, message = "bqd,bkd->bqk"}> : () -> ()
    %cst_92 = arith.constant dense<0.000000e+00> : vector<2x8x8xf32>
    %253 = tpu.matmul %246, %249, %cst_92 {dimension_numbers = #tpu.dot_dimension_numbers<[2], [2], [1], [1], [0, 0, 0, 1, 1, 1], [0], [0]>} : vector<2x8x8xbf16>, vector<2x8x8xbf16>, vector<2x8x8xf32> -> vector<2x8x8xf32>
    "tpu.trace_stop"() : () -> ()
    %cst_93 = arith.constant 0.353553385 : f32
    %254 = vector.broadcast %cst_93 : f32 to vector<2x8x8xf32>
    %255 = arith.mulf %253, %254 : vector<2x8x8xf32>
    %256 = vector.broadcast %27 : vector<2x1x8xf32> to vector<2x8x8xf32>
    %257 = arith.addf %255, %256 : vector<2x8x8xf32>
    %cst_94 = arith.constant dense<0xFF800000> : vector<2x8xf32>
    %258 = vector.multi_reduction <maximumf>, %257, %cst_94 [2] : vector<2x8x8xf32> to vector<2x8xf32>
    %259 = vector.shape_cast %258 : vector<2x8xf32> to vector<2x8x1xf32>
    %260 = vector.broadcast %259 : vector<2x8x1xf32> to vector<2x8x8xf32>
    %261 = arith.subf %257, %260 : vector<2x8x8xf32>
    %262 = math.exp %261 : vector<2x8x8xf32>
    %cst_95 = arith.constant dense<0.000000e+00> : vector<2x8xf32>
    %263 = vector.multi_reduction <add>, %262, %cst_95 [2] : vector<2x8x8xf32> to vector<2x8xf32>
    %264 = vector.shape_cast %263 : vector<2x8xf32> to vector<2x8x1xf32>
    %265 = vector.broadcast %264 : vector<2x8x1xf32> to vector<2x8x8xf32>
    %266 = arith.divf %262, %265 : vector<2x8x8xf32>
    %267 = arith.truncf %266 : vector<2x8x8xf32> to vector<2x8x8xbf16>
    "tpu.trace_start"() <{level = 10 : i32, message = "bqk,bkd->bqd"}> : () -> ()
    %cst_96 = arith.constant dense<0.000000e+00> : vector<2x8x8xf32>
    %268 = tpu.matmul %267, %252, %cst_96 {dimension_numbers = #tpu.dot_dimension_numbers<[2], [1], [1], [2], [0, 0, 0, 1, 1, 2], [0], [0]>} : vector<2x8x8xbf16>, vector<2x8x8xbf16>, vector<2x8x8xf32> -> vector<2x8x8xf32>
    "tpu.trace_stop"() : () -> ()
    %269 = vector.shape_cast %268 : vector<2x8x8xf32> to vector<16x8xf32>
    %270 = vector.extract_strided_slice %243 {offsets = [0, 8], sizes = [16, 8], strides = [1, 1]} : vector<16x96xf32> to vector<16x8xf32>
    %271 = vector.shape_cast %270 : vector<16x8xf32> to vector<2x8x8xf32>
    %272 = arith.truncf %271 : vector<2x8x8xf32> to vector<2x8x8xbf16>
    %273 = vector.extract_strided_slice %243 {offsets = [0, 40], sizes = [16, 8], strides = [1, 1]} : vector<16x96xf32> to vector<16x8xf32>
    %274 = vector.shape_cast %273 : vector<16x8xf32> to vector<2x8x8xf32>
    %275 = arith.truncf %274 : vector<2x8x8xf32> to vector<2x8x8xbf16>
    %276 = vector.extract_strided_slice %243 {offsets = [0, 72], sizes = [16, 8], strides = [1, 1]} : vector<16x96xf32> to vector<16x8xf32>
    %277 = vector.shape_cast %276 : vector<16x8xf32> to vector<2x8x8xf32>
    %278 = arith.truncf %277 : vector<2x8x8xf32> to vector<2x8x8xbf16>
    "tpu.trace_start"() <{level = 10 : i32, message = "bqd,bkd->bqk"}> : () -> ()
    %cst_97 = arith.constant dense<0.000000e+00> : vector<2x8x8xf32>
    %279 = tpu.matmul %272, %275, %cst_97 {dimension_numbers = #tpu.dot_dimension_numbers<[2], [2], [1], [1], [0, 0, 0, 1, 1, 1], [0], [0]>} : vector<2x8x8xbf16>, vector<2x8x8xbf16>, vector<2x8x8xf32> -> vector<2x8x8xf32>
    "tpu.trace_stop"() : () -> ()
    %cst_98 = arith.constant 0.353553385 : f32
    %280 = vector.broadcast %cst_98 : f32 to vector<2x8x8xf32>
    %281 = arith.mulf %279, %280 : vector<2x8x8xf32>
    %282 = vector.broadcast %27 : vector<2x1x8xf32> to vector<2x8x8xf32>
    %283 = arith.addf %281, %282 : vector<2x8x8xf32>
    %cst_99 = arith.constant dense<0xFF800000> : vector<2x8xf32>
    %284 = vector.multi_reduction <maximumf>, %283, %cst_99 [2] : vector<2x8x8xf32> to vector<2x8xf32>
    %285 = vector.shape_cast %284 : vector<2x8xf32> to vector<2x8x1xf32>
    %286 = vector.broadcast %285 : vector<2x8x1xf32> to vector<2x8x8xf32>
    %287 = arith.subf %283, %286 : vector<2x8x8xf32>
    %288 = math.exp %287 : vector<2x8x8xf32>
    %cst_100 = arith.constant dense<0.000000e+00> : vector<2x8xf32>
    %289 = vector.multi_reduction <add>, %288, %cst_100 [2] : vector<2x8x8xf32> to vector<2x8xf32>
    %290 = vector.shape_cast %289 : vector<2x8xf32> to vector<2x8x1xf32>
    %291 = vector.broadcast %290 : vector<2x8x1xf32> to vector<2x8x8xf32>
    %292 = arith.divf %288, %291 : vector<2x8x8xf32>
    %293 = arith.truncf %292 : vector<2x8x8xf32> to vector<2x8x8xbf16>
    "tpu.trace_start"() <{level = 10 : i32, message = "bqk,bkd->bqd"}> : () -> ()
    %cst_101 = arith.constant dense<0.000000e+00> : vector<2x8x8xf32>
    %294 = tpu.matmul %293, %278, %cst_101 {dimension_numbers = #tpu.dot_dimension_numbers<[2], [1], [1], [2], [0, 0, 0, 1, 1, 2], [0], [0]>} : vector<2x8x8xbf16>, vector<2x8x8xbf16>, vector<2x8x8xf32> -> vector<2x8x8xf32>
    "tpu.trace_stop"() : () -> ()
    %295 = vector.shape_cast %294 : vector<2x8x8xf32> to vector<16x8xf32>
    %296 = vector.extract_strided_slice %243 {offsets = [0, 16], sizes = [16, 8], strides = [1, 1]} : vector<16x96xf32> to vector<16x8xf32>
    %297 = vector.shape_cast %296 : vector<16x8xf32> to vector<2x8x8xf32>
    %298 = arith.truncf %297 : vector<2x8x8xf32> to vector<2x8x8xbf16>
    %299 = vector.extract_strided_slice %243 {offsets = [0, 48], sizes = [16, 8], strides = [1, 1]} : vector<16x96xf32> to vector<16x8xf32>
    %300 = vector.shape_cast %299 : vector<16x8xf32> to vector<2x8x8xf32>
    %301 = arith.truncf %300 : vector<2x8x8xf32> to vector<2x8x8xbf16>
    %302 = vector.extract_strided_slice %243 {offsets = [0, 80], sizes = [16, 8], strides = [1, 1]} : vector<16x96xf32> to vector<16x8xf32>
    %303 = vector.shape_cast %302 : vector<16x8xf32> to vector<2x8x8xf32>
    %304 = arith.truncf %303 : vector<2x8x8xf32> to vector<2x8x8xbf16>
    "tpu.trace_start"() <{level = 10 : i32, message = "bqd,bkd->bqk"}> : () -> ()
    %cst_102 = arith.constant dense<0.000000e+00> : vector<2x8x8xf32>
    %305 = tpu.matmul %298, %301, %cst_102 {dimension_numbers = #tpu.dot_dimension_numbers<[2], [2], [1], [1], [0, 0, 0, 1, 1, 1], [0], [0]>} : vector<2x8x8xbf16>, vector<2x8x8xbf16>, vector<2x8x8xf32> -> vector<2x8x8xf32>
    "tpu.trace_stop"() : () -> ()
    %cst_103 = arith.constant 0.353553385 : f32
    %306 = vector.broadcast %cst_103 : f32 to vector<2x8x8xf32>
    %307 = arith.mulf %305, %306 : vector<2x8x8xf32>
    %308 = vector.broadcast %27 : vector<2x1x8xf32> to vector<2x8x8xf32>
    %309 = arith.addf %307, %308 : vector<2x8x8xf32>
    %cst_104 = arith.constant dense<0xFF800000> : vector<2x8xf32>
    %310 = vector.multi_reduction <maximumf>, %309, %cst_104 [2] : vector<2x8x8xf32> to vector<2x8xf32>
    %311 = vector.shape_cast %310 : vector<2x8xf32> to vector<2x8x1xf32>
    %312 = vector.broadcast %311 : vector<2x8x1xf32> to vector<2x8x8xf32>
    %313 = arith.subf %309, %312 : vector<2x8x8xf32>
    %314 = math.exp %313 : vector<2x8x8xf32>
    %cst_105 = arith.constant dense<0.000000e+00> : vector<2x8xf32>
    %315 = vector.multi_reduction <add>, %314, %cst_105 [2] : vector<2x8x8xf32> to vector<2x8xf32>
    %316 = vector.shape_cast %315 : vector<2x8xf32> to vector<2x8x1xf32>
    %317 = vector.broadcast %316 : vector<2x8x1xf32> to vector<2x8x8xf32>
    %318 = arith.divf %314, %317 : vector<2x8x8xf32>
    %319 = arith.truncf %318 : vector<2x8x8xf32> to vector<2x8x8xbf16>
    "tpu.trace_start"() <{level = 10 : i32, message = "bqk,bkd->bqd"}> : () -> ()
    %cst_106 = arith.constant dense<0.000000e+00> : vector<2x8x8xf32>
    %320 = tpu.matmul %319, %304, %cst_106 {dimension_numbers = #tpu.dot_dimension_numbers<[2], [1], [1], [2], [0, 0, 0, 1, 1, 2], [0], [0]>} : vector<2x8x8xbf16>, vector<2x8x8xbf16>, vector<2x8x8xf32> -> vector<2x8x8xf32>
    "tpu.trace_stop"() : () -> ()
    %321 = vector.shape_cast %320 : vector<2x8x8xf32> to vector<16x8xf32>
    %322 = vector.extract_strided_slice %243 {offsets = [0, 24], sizes = [16, 8], strides = [1, 1]} : vector<16x96xf32> to vector<16x8xf32>
    %323 = vector.shape_cast %322 : vector<16x8xf32> to vector<2x8x8xf32>
    %324 = arith.truncf %323 : vector<2x8x8xf32> to vector<2x8x8xbf16>
    %325 = vector.extract_strided_slice %243 {offsets = [0, 56], sizes = [16, 8], strides = [1, 1]} : vector<16x96xf32> to vector<16x8xf32>
    %326 = vector.shape_cast %325 : vector<16x8xf32> to vector<2x8x8xf32>
    %327 = arith.truncf %326 : vector<2x8x8xf32> to vector<2x8x8xbf16>
    %328 = vector.extract_strided_slice %243 {offsets = [0, 88], sizes = [16, 8], strides = [1, 1]} : vector<16x96xf32> to vector<16x8xf32>
    %329 = vector.shape_cast %328 : vector<16x8xf32> to vector<2x8x8xf32>
    %330 = arith.truncf %329 : vector<2x8x8xf32> to vector<2x8x8xbf16>
    "tpu.trace_start"() <{level = 10 : i32, message = "bqd,bkd->bqk"}> : () -> ()
    %cst_107 = arith.constant dense<0.000000e+00> : vector<2x8x8xf32>
    %331 = tpu.matmul %324, %327, %cst_107 {dimension_numbers = #tpu.dot_dimension_numbers<[2], [2], [1], [1], [0, 0, 0, 1, 1, 1], [0], [0]>} : vector<2x8x8xbf16>, vector<2x8x8xbf16>, vector<2x8x8xf32> -> vector<2x8x8xf32>
    "tpu.trace_stop"() : () -> ()
    %cst_108 = arith.constant 0.353553385 : f32
    %332 = vector.broadcast %cst_108 : f32 to vector<2x8x8xf32>
    %333 = arith.mulf %331, %332 : vector<2x8x8xf32>
    %334 = vector.broadcast %27 : vector<2x1x8xf32> to vector<2x8x8xf32>
    %335 = arith.addf %333, %334 : vector<2x8x8xf32>
    %cst_109 = arith.constant dense<0xFF800000> : vector<2x8xf32>
    %336 = vector.multi_reduction <maximumf>, %335, %cst_109 [2] : vector<2x8x8xf32> to vector<2x8xf32>
    %337 = vector.shape_cast %336 : vector<2x8xf32> to vector<2x8x1xf32>
    %338 = vector.broadcast %337 : vector<2x8x1xf32> to vector<2x8x8xf32>
    %339 = arith.subf %335, %338 : vector<2x8x8xf32>
    %340 = math.exp %339 : vector<2x8x8xf32>
    %cst_110 = arith.constant dense<0.000000e+00> : vector<2x8xf32>
    %341 = vector.multi_reduction <add>, %340, %cst_110 [2] : vector<2x8x8xf32> to vector<2x8xf32>
    %342 = vector.shape_cast %341 : vector<2x8xf32> to vector<2x8x1xf32>
    %343 = vector.broadcast %342 : vector<2x8x1xf32> to vector<2x8x8xf32>
    %344 = arith.divf %340, %343 : vector<2x8x8xf32>
    %345 = arith.truncf %344 : vector<2x8x8xf32> to vector<2x8x8xbf16>
    "tpu.trace_start"() <{level = 10 : i32, message = "bqk,bkd->bqd"}> : () -> ()
    %cst_111 = arith.constant dense<0.000000e+00> : vector<2x8x8xf32>
    %346 = tpu.matmul %345, %330, %cst_111 {dimension_numbers = #tpu.dot_dimension_numbers<[2], [1], [1], [2], [0, 0, 0, 1, 1, 2], [0], [0]>} : vector<2x8x8xbf16>, vector<2x8x8xbf16>, vector<2x8x8xf32> -> vector<2x8x8xf32>
    "tpu.trace_stop"() : () -> ()
    %347 = vector.shape_cast %346 : vector<2x8x8xf32> to vector<16x8xf32>
    %348 = tpu.concatenate %269, %295, %321, %347 in 1 : vector<16x8xf32>, vector<16x8xf32>, vector<16x8xf32>, vector<16x8xf32> -> vector<16x32xf32>
    %c1_112 = arith.constant 1 : index
    %c0_113 = arith.constant 0 : index
    %c0_114 = arith.constant 0 : index
    %349 = vector.load %arg7[%c1_112, %c0_113, %c0_114] : memref<2x32x32xbf16, #tpu.memory_space<vmem>>, vector<1x32x32xbf16>
    %350 = vector.shape_cast %349 : vector<1x32x32xbf16> to vector<32x32xbf16>
    %351 = arith.truncf %348 : vector<16x32xf32> to vector<16x32xbf16>
    %cst_115 = arith.constant dense<0.000000e+00> : vector<16x32xf32>
    %352 = tpu.matmul %351, %350, %cst_115 {dimension_numbers = #tpu.dot_dimension_numbers<[1], [0], [0], [1], [0, 0, 1, 1], [], []>} : vector<16x32xbf16>, vector<32x32xbf16>, vector<16x32xf32> -> vector<16x32xf32>
    %c1_116 = arith.constant 1 : index
    %c0_117 = arith.constant 0 : index
    %c0_118 = arith.constant 0 : index
    %353 = vector.load %arg8[%c1_116, %c0_117, %c0_118] : memref<2x1x32xf32, #tpu.memory_space<vmem>>, vector<1x1x32xf32>
    %354 = vector.shape_cast %353 : vector<1x1x32xf32> to vector<1x32xf32>
    %355 = vector.broadcast %354 : vector<1x32xf32> to vector<16x32xf32>
    %356 = arith.addf %352, %355 : vector<16x32xf32>
    %357 = arith.addf %356, %235 : vector<16x32xf32>
    %c1_119 = arith.constant 1 : index
    %c0_120 = arith.constant 0 : index
    %c0_121 = arith.constant 0 : index
    %358 = vector.load %arg9[%c1_119, %c0_120, %c0_121] : memref<2x1x32xf32, #tpu.memory_space<vmem>>, vector<1x1x32xf32>
    %359 = vector.shape_cast %358 : vector<1x1x32xf32> to vector<1x32xf32>
    %c1_122 = arith.constant 1 : index
    %c0_123 = arith.constant 0 : index
    %c0_124 = arith.constant 0 : index
    %360 = vector.load %arg10[%c1_122, %c0_123, %c0_124] : memref<2x1x32xf32, #tpu.memory_space<vmem>>, vector<1x1x32xf32>
    %361 = vector.shape_cast %360 : vector<1x1x32xf32> to vector<1x32xf32>
    %cst_125 = arith.constant dense<0.000000e+00> : vector<16xf32>
    %362 = vector.multi_reduction <add>, %357, %cst_125 [1] : vector<16x32xf32> to vector<16xf32>
    %363 = vector.shape_cast %362 : vector<16xf32> to vector<16x1xf32>
    %cst_126 = arith.constant 3.200000e+01 : f32
    %364 = vector.broadcast %cst_126 : f32 to vector<16x1xf32>
    %365 = arith.divf %363, %364 : vector<16x1xf32>
    %366 = vector.broadcast %365 : vector<16x1xf32> to vector<16x32xf32>
    %367 = arith.subf %357, %366 : vector<16x32xf32>
    %368 = vector.broadcast %365 : vector<16x1xf32> to vector<16x32xf32>
    %369 = arith.subf %357, %368 : vector<16x32xf32>
    %370 = arith.mulf %367, %369 : vector<16x32xf32>
    %cst_127 = arith.constant dense<0.000000e+00> : vector<16xf32>
    %371 = vector.multi_reduction <add>, %370, %cst_127 [1] : vector<16x32xf32> to vector<16xf32>
    %372 = vector.shape_cast %371 : vector<16xf32> to vector<16x1xf32>
    %cst_128 = arith.constant 3.200000e+01 : f32
    %373 = vector.broadcast %cst_128 : f32 to vector<16x1xf32>
    %374 = arith.divf %372, %373 : vector<16x1xf32>
    %375 = vector.broadcast %365 : vector<16x1xf32> to vector<16x32xf32>
    %376 = arith.subf %357, %375 : vector<16x32xf32>
    %cst_129 = arith.constant 9.99999996E-13 : f32
    %377 = vector.broadcast %cst_129 : f32 to vector<16x1xf32>
    %378 = arith.addf %374, %377 : vector<16x1xf32>
    %379 = math.rsqrt %378 : vector<16x1xf32>
    %380 = vector.broadcast %379 : vector<16x1xf32> to vector<16x32xf32>
    %381 = arith.mulf %376, %380 : vector<16x32xf32>
    %382 = vector.broadcast %359 : vector<1x32xf32> to vector<16x32xf32>
    %383 = arith.mulf %381, %382 : vector<16x32xf32>
    %384 = vector.broadcast %361 : vector<1x32xf32> to vector<16x32xf32>
    %385 = arith.addf %383, %384 : vector<16x32xf32>
    %c1_130 = arith.constant 1 : index
    %c0_131 = arith.constant 0 : index
    %c0_132 = arith.constant 0 : index
    %386 = vector.load %arg11[%c1_130, %c0_131, %c0_132] : memref<2x32x64xbf16, #tpu.memory_space<vmem>>, vector<1x32x64xbf16>
    %387 = vector.shape_cast %386 : vector<1x32x64xbf16> to vector<32x64xbf16>
    %388 = arith.truncf %385 : vector<16x32xf32> to vector<16x32xbf16>
    %cst_133 = arith.constant dense<0.000000e+00> : vector<16x64xf32>
    %389 = tpu.matmul %388, %387, %cst_133 {dimension_numbers = #tpu.dot_dimension_numbers<[1], [0], [0], [1], [0, 0, 1, 1], [], []>} : vector<16x32xbf16>, vector<32x64xbf16>, vector<16x64xf32> -> vector<16x64xf32>
    %c1_134 = arith.constant 1 : index
    %c0_135 = arith.constant 0 : index
    %c0_136 = arith.constant 0 : index
    %390 = vector.load %arg12[%c1_134, %c0_135, %c0_136] : memref<2x1x64xf32, #tpu.memory_space<vmem>>, vector<1x1x64xf32>
    %391 = vector.shape_cast %390 : vector<1x1x64xf32> to vector<1x64xf32>
    %392 = vector.broadcast %391 : vector<1x64xf32> to vector<16x64xf32>
    %393 = arith.addf %389, %392 : vector<16x64xf32>
    %cst_137 = arith.constant 5.000000e-01 : f32
    %394 = vector.broadcast %cst_137 : f32 to vector<16x64xf32>
    %395 = arith.mulf %394, %393 : vector<16x64xf32>
    %cst_138 = arith.constant 4.471500e-02 : f32
    %396 = vector.broadcast %cst_138 : f32 to vector<16x64xf32>
    %397 = arith.mulf %396, %393 : vector<16x64xf32>
    %398 = arith.mulf %397, %393 : vector<16x64xf32>
    %399 = arith.mulf %398, %393 : vector<16x64xf32>
    %400 = arith.addf %393, %399 : vector<16x64xf32>
    %cst_139 = arith.constant 0.797884583 : f32
    %401 = vector.broadcast %cst_139 : f32 to vector<16x64xf32>
    %402 = arith.mulf %401, %400 : vector<16x64xf32>
    %403 = math.tanh %402 : vector<16x64xf32>
    %cst_140 = arith.constant 1.000000e+00 : f32
    %404 = vector.broadcast %cst_140 : f32 to vector<16x64xf32>
    %405 = arith.addf %404, %403 : vector<16x64xf32>
    %406 = arith.mulf %395, %405 : vector<16x64xf32>
    %c1_141 = arith.constant 1 : index
    %c0_142 = arith.constant 0 : index
    %c0_143 = arith.constant 0 : index
    %407 = vector.load %arg13[%c1_141, %c0_142, %c0_143] : memref<2x64x32xbf16, #tpu.memory_space<vmem>>, vector<1x64x32xbf16>
    %408 = vector.shape_cast %407 : vector<1x64x32xbf16> to vector<64x32xbf16>
    %409 = arith.truncf %406 : vector<16x64xf32> to vector<16x64xbf16>
    %cst_144 = arith.constant dense<0.000000e+00> : vector<16x32xf32>
    %410 = tpu.matmul %409, %408, %cst_144 {dimension_numbers = #tpu.dot_dimension_numbers<[1], [0], [0], [1], [0, 0, 1, 1], [], []>} : vector<16x64xbf16>, vector<64x32xbf16>, vector<16x32xf32> -> vector<16x32xf32>
    %c1_145 = arith.constant 1 : index
    %c0_146 = arith.constant 0 : index
    %c0_147 = arith.constant 0 : index
    %411 = vector.load %arg14[%c1_145, %c0_146, %c0_147] : memref<2x1x32xf32, #tpu.memory_space<vmem>>, vector<1x1x32xf32>
    %412 = vector.shape_cast %411 : vector<1x1x32xf32> to vector<1x32xf32>
    %413 = vector.broadcast %412 : vector<1x32xf32> to vector<16x32xf32>
    %414 = arith.addf %410, %413 : vector<16x32xf32>
    %415 = arith.addf %414, %385 : vector<16x32xf32>
    %c1_148 = arith.constant 1 : index
    %c0_149 = arith.constant 0 : index
    %c0_150 = arith.constant 0 : index
    %416 = vector.load %arg15[%c1_148, %c0_149, %c0_150] : memref<2x1x32xf32, #tpu.memory_space<vmem>>, vector<1x1x32xf32>
    %417 = vector.shape_cast %416 : vector<1x1x32xf32> to vector<1x32xf32>
    %c1_151 = arith.constant 1 : index
    %c0_152 = arith.constant 0 : index
    %c0_153 = arith.constant 0 : index
    %418 = vector.load %arg16[%c1_151, %c0_152, %c0_153] : memref<2x1x32xf32, #tpu.memory_space<vmem>>, vector<1x1x32xf32>
    %419 = vector.shape_cast %418 : vector<1x1x32xf32> to vector<1x32xf32>
    %cst_154 = arith.constant dense<0.000000e+00> : vector<16xf32>
    %420 = vector.multi_reduction <add>, %415, %cst_154 [1] : vector<16x32xf32> to vector<16xf32>
    %421 = vector.shape_cast %420 : vector<16xf32> to vector<16x1xf32>
    %cst_155 = arith.constant 3.200000e+01 : f32
    %422 = vector.broadcast %cst_155 : f32 to vector<16x1xf32>
    %423 = arith.divf %421, %422 : vector<16x1xf32>
    %424 = vector.broadcast %423 : vector<16x1xf32> to vector<16x32xf32>
    %425 = arith.subf %415, %424 : vector<16x32xf32>
    %426 = vector.broadcast %423 : vector<16x1xf32> to vector<16x32xf32>
    %427 = arith.subf %415, %426 : vector<16x32xf32>
    %428 = arith.mulf %425, %427 : vector<16x32xf32>
    %cst_156 = arith.constant dense<0.000000e+00> : vector<16xf32>
    %429 = vector.multi_reduction <add>, %428, %cst_156 [1] : vector<16x32xf32> to vector<16xf32>
    %430 = vector.shape_cast %429 : vector<16xf32> to vector<16x1xf32>
    %cst_157 = arith.constant 3.200000e+01 : f32
    %431 = vector.broadcast %cst_157 : f32 to vector<16x1xf32>
    %432 = arith.divf %430, %431 : vector<16x1xf32>
    %433 = vector.broadcast %423 : vector<16x1xf32> to vector<16x32xf32>
    %434 = arith.subf %415, %433 : vector<16x32xf32>
    %cst_158 = arith.constant 9.99999996E-13 : f32
    %435 = vector.broadcast %cst_158 : f32 to vector<16x1xf32>
    %436 = arith.addf %432, %435 : vector<16x1xf32>
    %437 = math.rsqrt %436 : vector<16x1xf32>
    %438 = vector.broadcast %437 : vector<16x1xf32> to vector<16x32xf32>
    %439 = arith.mulf %434, %438 : vector<16x32xf32>
    %440 = vector.broadcast %417 : vector<1x32xf32> to vector<16x32xf32>
    %441 = arith.mulf %439, %440 : vector<16x32xf32>
    %442 = vector.broadcast %419 : vector<1x32xf32> to vector<16x32xf32>
    %443 = arith.addf %441, %442 : vector<16x32xf32>
    %444 = vector.extract_strided_slice %443 {offsets = [0, 0], sizes = [1, 32], strides = [1, 1]} : vector<16x32xf32> to vector<1x32xf32>
    %445 = vector.extract_strided_slice %443 {offsets = [8, 0], sizes = [1, 32], strides = [1, 1]} : vector<16x32xf32> to vector<1x32xf32>
    %446 = tpu.concatenate %444, %445 in 0 : vector<1x32xf32>, vector<1x32xf32> -> vector<2x32xf32>
    %c0_159 = arith.constant 0 : index
    %c0_160 = arith.constant 0 : index
    %447 = vector.load %arg17[%c0_159, %c0_160] : memref<32x32xbf16, #tpu.memory_space<vmem>>, vector<32x32xbf16>
    %448 = arith.truncf %446 : vector<2x32xf32> to vector<2x32xbf16>
    %cst_161 = arith.constant dense<0.000000e+00> : vector<2x32xf32>
    %449 = tpu.matmul %448, %447, %cst_161 {dimension_numbers = #tpu.dot_dimension_numbers<[1], [0], [0], [1], [0, 0, 1, 1], [], []>} : vector<2x32xbf16>, vector<32x32xbf16>, vector<2x32xf32> -> vector<2x32xf32>
    %c0_162 = arith.constant 0 : index
    %c0_163 = arith.constant 0 : index
    %450 = vector.load %arg18[%c0_162, %c0_163] : memref<1x32xf32, #tpu.memory_space<vmem>>, vector<1x32xf32>
    %451 = vector.broadcast %450 : vector<1x32xf32> to vector<2x32xf32>
    %452 = arith.addf %449, %451 : vector<2x32xf32>
    %453 = math.tanh %452 : vector<2x32xf32>
    %c0_164 = arith.constant 0 : index
    %c0_165 = arith.constant 0 : index
    %454 = vector.load %arg19[%c0_164, %c0_165] : memref<32x10xbf16, #tpu.memory_space<vmem>>, vector<32x10xbf16>
    %455 = arith.truncf %453 : vector<2x32xf32> to vector<2x32xbf16>
    %cst_166 = arith.constant dense<0.000000e+00> : vector<2x10xf32>
    %456 = tpu.matmul %455, %454, %cst_166 {dimension_numbers = #tpu.dot_dimension_numbers<[1], [0], [0], [1], [0, 0, 1, 1], [], []>} : vector<2x32xbf16>, vector<32x10xbf16>, vector<2x10xf32> -> vector<2x10xf32>
    %c0_167 = arith.constant 0 : index
    %c0_168 = arith.constant 0 : index
    %457 = vector.load %arg20[%c0_167, %c0_168] : memref<1x10xf32, #tpu.memory_space<vmem>>, vector<1x10xf32>
    %458 = vector.broadcast %457 : vector<1x10xf32> to vector<2x10xf32>
    %459 = arith.addf %456, %458 : vector<2x10xf32>
    %c0_169 = arith.constant 0 : index
    %c0_170 = arith.constant 0 : index
    %460 = vector.load %arg21[%c0_169, %c0_170] : memref<2x10xf32, #tpu.memory_space<vmem>>, vector<2x10xf32>
    tpu.vector_store %arg21[%c0_169, %c0_170], %459 {strides = array<i32>} : memref<2x10xf32, #tpu.memory_space<vmem>>, vector<2x10xf32>,
    return
  }
  func.func @transform_0(%arg0: i32) -> (i32, i32) {
    %c0_i32 = arith.constant 0 : i32
    %c0_i32_0 = arith.constant 0 : i32
    %c0_i32_1 = arith.constant 0 : i32
    return %c0_i32, %c0_i32_0 : i32, i32
  }
  func.func @transform_1(%arg0: i32) -> (i32, i32, i32) {
    %c0_i32 = arith.constant 0 : i32
    %c0_i32_0 = arith.constant 0 : i32
    %c0_i32_1 = arith.constant 0 : i32
    %c0_i32_2 = arith.constant 0 : i32
    return %c0_i32, %c0_i32_0, %c0_i32_1 : i32, i32, i32
  }
  func.func @transform_2(%arg0: i32) -> (i32, i32) {
    %c0_i32 = arith.constant 0 : i32
    %c0_i32_0 = arith.constant 0 : i32
    %c0_i32_1 = arith.constant 0 : i32
    return %c0_i32, %c0_i32_0 : i32, i32
  }
  func.func @transform_3(%arg0: i32) -> (i32, i32) {
    %c0_i32 = arith.constant 0 : i32
    %c0_i32_0 = arith.constant 0 : i32
    %c0_i32_1 = arith.constant 0 : i32
    return %c0_i32, %c0_i32_0 : i32, i32
  }
  func.func @transform_4(%arg0: i32) -> (i32, i32, i32) {
    %c0_i32 = arith.constant 0 : i32
    %c0_i32_0 = arith.constant 0 : i32
    %c0_i32_1 = arith.constant 0 : i32
    %c0_i32_2 = arith.constant 0 : i32
    return %c0_i32, %c0_i32_0, %c0_i32_1 : i32, i32, i32
  }
  func.func @transform_5(%arg0: i32) -> (i32, i32, i32) {
    %c0_i32 = arith.constant 0 : i32
    %c0_i32_0 = arith.constant 0 : i32
    %c0_i32_1 = arith.constant 0 : i32
    %c0_i32_2 = arith.constant 0 : i32
    return %c0_i32, %c0_i32_0, %c0_i32_1 : i32, i32, i32
  }
  func.func @transform_6(%arg0: i32) -> (i32, i32, i32) {
    %c0_i32 = arith.constant 0 : i32
    %c0_i32_0 = arith.constant 0 : i32
    %c0_i32_1 = arith.constant 0 : i32
    %c0_i32_2 = arith.constant 0 : i32
    return %c0_i32, %c0_i32_0, %c0_i32_1 : i32, i32, i32
  }
  func.func @transform_7(%arg0: i32) -> (i32, i32, i32) {
    %c0_i32 = arith.constant 0 : i32
    %c0_i32_0 = arith.constant 0 : i32
    %c0_i32_1 = arith.constant 0 : i32
    %c0_i32_2 = arith.constant 0 : i32
    return %c0_i32, %c0_i32_0, %c0_i32_1 : i32, i32, i32
  }
  func.func @transform_8(%arg0: i32) -> (i32, i32, i32) {
    %c0_i32 = arith.constant 0 : i32
    %c0_i32_0 = arith.constant 0 : i32
    %c0_i32_1 = arith.constant 0 : i32
    %c0_i32_2 = arith.constant 0 : i32
    return %c0_i32, %c0_i32_0, %c0_i32_1 : i32, i32, i32
  }
  func.func @transform_9(%arg0: i32) -> (i32, i32, i32) {
    %c0_i32 = arith.constant 0 : i32
    %c0_i32_0 = arith.constant 0 : i32
    %c0_i32_1 = arith.constant 0 : i32
    %c0_i32_2 = arith.constant 0 : i32
    return %c0_i32, %c0_i32_0, %c0_i32_1 : i32, i32, i32
  }
  func.func @transform_10(%arg0: i32) -> (i32, i32, i32) {
    %c0_i32 = arith.constant 0 : i32
    %c0_i32_0 = arith.constant 0 : i32
    %c0_i32_1 = arith.constant 0 : i32
    %c0_i32_2 = arith.constant 0 : i32
    return %c0_i32, %c0_i32_0, %c0_i32_1 : i32, i32, i32
  }
  func.func @transform_11(%arg0: i32) -> (i32, i32, i32) {
    %c0_i32 = arith.constant 0 : i32
    %c0_i32_0 = arith.constant 0 : i32
    %c0_i32_1 = arith.constant 0 : i32
    %c0_i32_2 = arith.constant 0 : i32
    return %c0_i32, %c0_i32_0, %c0_i32_1 : i32, i32, i32
  }
  func.func @transform_12(%arg0: i32) -> (i32, i32, i32) {
    %c0_i32 = arith.constant 0 : i32
    %c0_i32_0 = arith.constant 0 : i32
    %c0_i32_1 = arith.constant 0 : i32
    %c0_i32_2 = arith.constant 0 : i32
    return %c0_i32, %c0_i32_0, %c0_i32_1 : i32, i32, i32
  }
  func.func @transform_13(%arg0: i32) -> (i32, i32, i32) {
    %c0_i32 = arith.constant 0 : i32
    %c0_i32_0 = arith.constant 0 : i32
    %c0_i32_1 = arith.constant 0 : i32
    %c0_i32_2 = arith.constant 0 : i32
    return %c0_i32, %c0_i32_0, %c0_i32_1 : i32, i32, i32
  }
  func.func @transform_14(%arg0: i32) -> (i32, i32, i32) {
    %c0_i32 = arith.constant 0 : i32
    %c0_i32_0 = arith.constant 0 : i32
    %c0_i32_1 = arith.constant 0 : i32
    %c0_i32_2 = arith.constant 0 : i32
    return %c0_i32, %c0_i32_0, %c0_i32_1 : i32, i32, i32
  }
  func.func @transform_15(%arg0: i32) -> (i32, i32, i32) {
    %c0_i32 = arith.constant 0 : i32
    %c0_i32_0 = arith.constant 0 : i32
    %c0_i32_1 = arith.constant 0 : i32
    %c0_i32_2 = arith.constant 0 : i32
    return %c0_i32, %c0_i32_0, %c0_i32_1 : i32, i32, i32
  }
  func.func @transform_16(%arg0: i32) -> (i32, i32) {
    %c0_i32 = arith.constant 0 : i32
    %c0_i32_0 = arith.constant 0 : i32
    %c0_i32_1 = arith.constant 0 : i32
    return %c0_i32, %c0_i32_0 : i32, i32
  }
  func.func @transform_17(%arg0: i32) -> (i32, i32) {
    %c0_i32 = arith.constant 0 : i32
    %c0_i32_0 = arith.constant 0 : i32
    %c0_i32_1 = arith.constant 0 : i32
    return %c0_i32, %c0_i32_0 : i32, i32
  }
  func.func @transform_18(%arg0: i32) -> (i32, i32) {
    %c0_i32 = arith.constant 0 : i32
    %c0_i32_0 = arith.constant 0 : i32
    %c0_i32_1 = arith.constant 0 : i32
    return %c0_i32, %c0_i32_0 : i32, i32
  }
  func.func @transform_19(%arg0: i32) -> (i32, i32) {
    %c0_i32 = arith.constant 0 : i32
    %c0_i32_0 = arith.constant 0 : i32
    %c0_i32_1 = arith.constant 0 : i32
    return %c0_i32, %c0_i32_0 : i32, i32
  }
  func.func @transform_20(%arg0: i32) -> (i32, i32) {
    %c0_i32 = arith.constant 0 : i32
    %c0_i32_0 = arith.constant 0 : i32
    %c0_i32_1 = arith.constant 0 : i32
    return %c0_i32, %c0_i32_0 : i32, i32
  }
}

</mosaic_0001>

<bundles_post_ra>
// kernel: bert_nn_forward.1
= control target key start
LH: loop header
LB: loop body
LE: loop exit
PB: predicated region body
PF: predicated region fallthrough
CT: control target
= control target key end

     0   :  { %s4373_s0 = inlined_call_operand.vmem [shape: f32[16,32], index: 0, kind: input, shape index: {}]   ;;  %s4374_s1 = inlined_call_operand.vmem [shape: f32[2,1,8], index: 1, kind: input, shape index: {}]   ;;  %s4375_s2 = inlined_call_operand.vmem [shape: f32[1,32], index: 2, kind: input, shape index: {}]   ;;  %s4376_s3 = inlined_call_operand.vmem [shape: f32[1,32], index: 3, kind: input, shape index: {}]   ;;  %s4377_s4 = inlined_call_operand.vmem [shape: bf16[2,32,96], index: 4, kind: input, shape index: {}]   ;;  %s4378_s5 = inlined_call_operand.vmem [shape: f32[2,1,96], index: 5, kind: input, shape index: {}]   ;;  %s4379_s6 = inlined_call_operand.vmem [shape: bf16[2,32,32], index: 6, kind: input, shape index: {}]   ;;  %s4380_s7 = inlined_call_operand.vmem [shape: f32[2,1,32], index: 7, kind: input, shape index: {}]   ;;  %s4381_s8 = inlined_call_operand.vmem [shape: f32[2,1,32], index: 8, kind: input, shape index: {}]   ;;  %s4382_s9 = inlined_call_operand.vmem [shape: f32[2,1,32], index: 9, kind: input, shape index: {}]   ;;  %s4383_s10 = inlined_call_operand.vmem [shape: bf16[2,32,64], index: 10, kind: input, shape index: {}]   ;;  %s4384_s11 = inlined_call_operand.vmem [shape: f32[2,1,64], index: 11, kind: input, shape index: {}]   ;;  %s4385_s12 = inlined_call_operand.vmem [shape: bf16[2,64,32], index: 12, kind: input, shape index: {}]   ;;  %s4386_s13 = inlined_call_operand.vmem [shape: f32[2,1,32], index: 13, kind: input, shape index: {}]   ;;  %s4387_s14 = inlined_call_operand.vmem [shape: f32[2,1,32], index: 14, kind: input, shape index: {}]   ;;  %s4388_s15 = inlined_call_operand.vmem [shape: f32[2,1,32], index: 15, kind: input, shape index: {}]   ;;  %s4389_s16 = inlined_call_operand.vmem [shape: bf16[32,32], index: 16, kind: input, shape index: {}]   ;;  %s4390_s17 = inlined_call_operand.vmem [shape: f32[1,32], index: 17, kind: input, shape index: {}]   ;;  %s4391_s18 = inlined_call_operand.vmem [shape: bf16[32,10], index: 18, kind: input, shape index: {}]   ;;  %s4392_s19 = inlined_call_operand.vmem [shape: f32[1,10], index: 19, kind: input, shape index: {}]   ;;  %s4393_s20 = inlined_call_operand.hbm [shape: f32[2,10], index: 20, kind: output, shape index: {}]  }
   0x1   :  { %4412 = sst [smem:[#allocation5_spill]] %s4373_s0 }
   0x2   :  { %4413 = sst [smem:[#allocation6_spill]] %s4374_s1 }
   0x3   :  { %4414 = sst [smem:[#allocation7_spill]] %s4375_s2 }
   0x4   :  { %4415 = sst [smem:[#allocation8_spill]] %s4376_s3 }
   0x5   :  { %4416 = sst [smem:[#allocation9_spill]] %s4377_s4 }
   0x6   :  { %s4417_s23 = sld [smem:[#allocation5_spill]]  ;;  %vm71_vm0 = vcmask 261120  }
   0xc   :  { %v67_v0 = vld [vmem:[%s4417_s23] sm:$0xff]  ;;  %v68_v1 = vld [vmem:[%s4417_s23 + $0x8] sm:$0xff] }
   0xd   :  { %v72_v2 = vsel %vm71_vm0, %v67_v0, 0.0  ;;  %v75_v3 = vsel %vm71_vm0, %v68_v1, 0.0 }
   0xe   :  { %73 = vadd.xlane.f32.xlu0 %v72_v2 }
  0x12   :  { %76 = vadd.xlane.f32.xlu0 %v75_v3 }
  0x13   :  { %25 = vsyncpa [#allocation3], 0  ;;  %s4418_s26 = sld [smem:[#allocation9_spill]]  ;;  %v3635_v15 = vmov 0.0   ;;  %vm3636_vm1 = vmmov 0   ;;  %s4419_s30 = sld [smem:[#allocation7_spill]] }
  0x14   :  { %3164 = vmatprep.subr.bf16.mxu0 %v3635_v15  ;;  %3168 = vmatprep.mubr.msk.bf16.mxu0 %vm3636_vm1, %v3635_v15  ;;  %s4420_s1 = sld [smem:[#allocation8_spill]]  ;;  %v2952_v34 = vld [vmem:[%s4378_s5] ss:$0 sm:$0xff]  ;;  %s3637_s24 = smov 96   ;;  %vm190_vm2 = vcmask 64512   ;;  %vm331_vm3 = vcmask 1043456  }
  0x15   :  { %3172 = vmatprep.subr.bf16.mxu1 %v3635_v15  ;;  %3174 = vmatprep.mubr.msk.bf16.mxu1 %vm3636_vm1, %v3635_v15  ;;  %s4421_s3 = sld [smem:[#allocation6_spill]]  ;;  %s3638_s4 = smov 64   ;;  %vm1121_vm4 = vcmask 130048   ;;  %vm1124_vm5 = vcmask 195584   ;;  %vm1367_vm6 = vcmask 523264   ;;  %vm2797_vm7 = vcmask 1040384  }
  0x16   :  { %s3639_s29 = smov 88   ;;  %s3641_s0 = smov 56   ;;  %vm2934_vm8 = vcmask 74752  }
  0x17   :  { %s4410_s21 = smov 80   ;;  %s4406_s22 = smov 48  }
  0x18   :  { %s4404_s23 = smov 72   ;;  %s4401_s2 = smov 104  }
  0x19   :  { %v3491_v14 = vld [vmem:[%s4418_s26] sm:$0xff]   ;;  %v3492_v16 = vld [vmem:[%s4418_s26 + $0x8] sm:$0xff]   ;;  %s4399_s25 = smov 40   ;;  %s4398_s27 = smov 8  }
  0x1a   :  { %3165 = vmatpush3.bf16.msra.mxu0 %v3491_v14  ;;  %v2950_v25 = vld [vmem:[%s4419_s30] ss:$0 sm:$0xff]  ;;  %s3640_s30 = smov 120   ;;  %s4397_s28 = smov 16  }
  0x1b   :  { %3166 = vmatprep.subr.bf16.mxu0 %v3635_v15  ;;  %v2951_v29 = vld [vmem:[%s4420_s1] ss:$0 sm:$0xff]  ;;  %v3827_v53 = vld [vmem:[%s4421_s3 + $0x1] ss:$0 sm:$0xff]  ;;  %s4408_s1 = smov 112  }
  0x1c   :  { %v3822_v48 = vld [vmem:[%s4421_s3] ss:$0 sm:$0xff] }
  0x1e   :  { %3167 = vmatpush3.bf16.msra.mxu0 %v3492_v16 }
  0x1f   :  { %3178 = vmatprep.subr.bf16.mxu0 %v3635_v15 }
  0x9b   :  { %v74_v4 = vpop.xlane.xlu0 %73 }
  0x9c   :  { %v79_v5 = vmul.f32 0.03125, %v74_v4 }
  0x9e   :  { %v81_v6 = vsub.f32 %v67_v0, %v79_v5 }
  0x9f   :  { %v77_v7 = vpop.xlane.xlu0 %76 }
  0xa0   :  { %v80_v8 = vmul.f32 0.03125, %v77_v7  ;;  %v83_v9 = vmul.f32 %v81_v6, %v81_v6 }
  0xa2   :  { %v82_v10 = vsub.f32 %v68_v1, %v80_v8  ;;  %v85_v11 = vsel %vm71_vm0, %v83_v9, 0.0 }
  0xa3   :  { %86 = vadd.xlane.f32.xlu1 %v85_v11 }
  0xa4   :  { %v84_v12 = vmul.f32 %v82_v10, %v82_v10 }
  0xa6   :  { %v88_v13 = vsel %vm71_vm0, %v84_v12, 0.0 }
  0xa7   :  { %89 = vadd.xlane.f32.xlu1 %v88_v13 }
 0x130   :  { %v87_v17 = vpop.xlane.xlu1 %86 }
 0x131   :  { %v91_v18 = vmul.f32 0.03125, %v87_v17 }
 0x133   :  { %v93_v19 = vadd.f32 1e-12, %v91_v18 }
 0x134   :  { %v90_v20 = vpop.xlane.xlu1 %89 }
 0x135   :  { %3515 = vrsqrt.f32 %v93_v19  ;;  %v92_v21 = vmul.f32 0.03125, %v90_v20 }
 0x137   :  { %v94_v22 = vadd.f32 1e-12, %v92_v21 }
 0x139   :  { %3517 = vrsqrt.f32 %v94_v22 }
 0x13f   :  { %v3516_v23 = vpop.eup %3515 }
 0x140   :  { %v97_v24 = vmul.f32 %v3516_v23, %v81_v6 }
 0x142   :  { %v105_v28 = vmul.f32 %v2950_v25, %v97_v24 }
 0x143   :  { %v3518_v26 = vpop.eup %3517 }
 0x144   :  { %v98_v27 = vmul.f32 %v3518_v26, %v82_v10  ;;  %v3787_v31 = vadd.f32 %v2951_v29, %v105_v28 }
 0x146   :  { %v106_v30 = vmul.f32 %v2950_v25, %v98_v27 }
 0x148   :  { %v3789_v32 = vadd.f32 %v2951_v29, %v106_v30 }
 0x14a   :  { %v121_v33 = vpack.c.bf16 %v3789_v32, %v3787_v31 }
 0x14c   :  { %3169 = vmatmul.mubr.msk.bf16.vlgmr.msra.gmra.mrb[0].mxu0 %vm71_vm0, %v121_v33 }
 0x14d   :  { %3180 = vmatprep.mubr.msk.bf16.mxu0 %vm3636_vm1, %v3635_v15 }
 0x21f   :  { %v178_v35 = vpop.f32.mrb[0].mxu0 }
 0x220   :  { %v179_v36 = vadd.f32 %v2952_v34, %v178_v35  ;;  %v3170_v37 = vpop.f32.mrb[1].mxu0 }
 0x221   :  { %v181_v38 = vpop.f32.mrb[2].mxu0 }
 0x222   :  { %v3799_v39 = vpack.c.bf16 %v179_v36, %v179_v36  ;;  %v182_v40 = vadd.f32 %v2952_v34, %v181_v38  ;;  %v3171_v41 = vpop.f32.mrb[3].mxu0 }
 0x224   :  { %v3801_v42 = vpack.c.bf16 %v182_v40, %v182_v40  ;;  %188 = vrot.lane.b32.xlu0 %v3799_v39, %s3637_s24 }
 0x226   :  { %238 = vrot.lane.b32.xlu1 %v3801_v42, %s3637_s24 }
 0x296   :  { %v189_v43 = vpop.permute.xlu0 %188 }
 0x297   :  { %v195_v44 = vsel %vm190_vm2, %v189_v43, 0 }
 0x298   :  { %3173 = vmatpush3.bf16.xpose.msra.mxu1 %v195_v44  ;;  %v239_v45 = vpop.permute.xlu1 %238 }
 0x299   :  { %v244_v46 = vsel %vm190_vm2, %v239_v45, 0  ;;  %3184 = vmatprep.subr.bf16.mxu1 %v3635_v15 }
 0x29a   :  { %3179 = vmatpush3.bf16.xpose.msra.mxu0 %v244_v46 }
 0x29b   :  { %3190 = vmatprep.subr.bf16.mxu0 %v3635_v15 }
 0x29f   :  { %3175 = vmatmul.mubr.msk.bf16.vlgmr.msra.gmra.mrb[0].mxu1 %vm190_vm2, %v3799_v39 }
 0x2a0   :  { %3186 = vmatprep.mubr.msk.bf16.mxu1 %vm3636_vm1, %v3635_v15 }
 0x2a1   :  { %3181 = vmatmul.mubr.msk.bf16.vlgmr.msra.gmra.mrb[4].mxu0 %vm190_vm2, %v3801_v42 }
 0x2a2   :  { %3192 = vmatprep.mubr.msk.bf16.mxu0 %vm3636_vm1, %v3635_v15 }
 0x372   :  { %v231_v47 = vpop.f32.mrb[0].mxu1 }
 0x373   :  { %v286_v49 = vmul.f32 0.35355338, %v231_v47  ;;  %v3176_v50 = vpop.f32.mrb[1].mxu1 }
 0x374   :  { %v234_v51 = vpop.f32.mrb[2].mxu1  ;;  %v280_v52 = vpop.f32.mrb[4].mxu0 }
 0x375   :  { %v287_v54 = vmul.f32 0.35355338, %v280_v52  ;;  %v3177_v55 = vpop.f32.mrb[3].mxu1  ;;  %v3182_v56 = vpop.f32.mrb[5].mxu0  ;;  %v300_v57 = vadd.f32 %v3822_v48, %v286_v49 }
 0x376   :  { %v283_v58 = vpop.f32.mrb[6].mxu0 }
 0x377   :  { %v3183_v59 = vpop.f32.mrb[7].mxu0  ;;  %v302_v60 = vsel %vm190_vm2, %v300_v57, -inf  ;;  %v301_v61 = vadd.f32 %v3827_v53, %v287_v54 }
 0x378   :  { %303 = vmax.xlane.f32.xlu1 %v302_v60 }
 0x379   :  { %v305_v62 = vsel %vm190_vm2, %v301_v61, -inf }
 0x37a   :  { %306 = vmax.xlane.f32.xlu0 %v305_v62 }
 0x389   :  { %375 = vrot.lane.b32.xlu1 %v3801_v42, %s3638_s4 }
 0x38d   :  { %425 = vrot.lane.b32.xlu1 %v3799_v39, %s3639_s29 }
 0x405   :  { %v304_v63 = vpop.xlane.xlu1 %303 }
 0x406   :  { %v308_v0 = vsub.f32 %v300_v57, %v304_v63 }
 0x407   :  { %v307_v1 = vpop.xlane.xlu0 %306 }
 0x408   :  { %v310_v2 = vmul.f32 1.442695, %v308_v0  ;;  %v309_v3 = vsub.f32 %v301_v61, %v307_v1 }
 0x409   :  { %v376_v4 = vpop.permute.xlu1 %375 }
 0x40a   :  { %3519 = vpow2.f32 %v310_v2  ;;  %v312_v5 = vmul.f32 1.442695, %v309_v3  ;;  %v381_v6 = vsel %vm331_vm3, %v376_v4, 0 }
 0x40b   :  { %3191 = vmatpush3.bf16.msra.mxu0 %v381_v6 }
 0x40c   :  { %3521 = vpow2.f32 %v312_v5  ;;  %3202 = vmatprep.subr.bf16.mxu0 %v3635_v15 }
 0x40d   :  { %v426_v11 = vpop.permute.xlu1 %425 }
 0x40e   :  { %v431_v23 = vsel %vm190_vm2, %v426_v11, 0 }
 0x414   :  { %v3520_v7 = vpop.eup %3519 }
 0x415   :  { %v314_v8 = vsel %vm190_vm2, %v3520_v7, 0.0 }
 0x416   :  { %v3522_v9 = vpop.eup %3521  ;;  %315 = vadd.xlane.f32.xlu0 %v314_v8 }
 0x417   :  { %v317_v10 = vsel %vm190_vm2, %v3522_v9, 0.0 }
 0x418   :  { %318 = vadd.xlane.f32.xlu1 %v317_v10 }
 0x429   :  { %475 = vrot.lane.b32.xlu1 %v3801_v42, %s3639_s29 }
 0x42c   :  { %326 = vrot.lane.b32.xlu0 %v3799_v39, %s3638_s4 }
 0x42d   :  { %473 = vrot.lane.b32.xlu1 %v3801_v42, %s3640_s30 }
 0x430   :  { %423 = vrot.lane.b32.xlu0 %v3799_v39, %s3640_s30 }
 0x4a3   :  { %v316_v12 = vpop.xlane.xlu0 %315 }
 0x4a4   :  { %3523 = vrcp.f32 %v316_v12 }
 0x4a5   :  { %v319_v13 = vpop.xlane.xlu1 %318 }
 0x4a6   :  { %3525 = vrcp.f32 %v319_v13 }
 0x4a7   :  { %v327_v14 = vpop.permute.xlu0 %326 }
 0x4a8   :  { %v333_v16 = vsel %vm331_vm3, %v327_v14, 0 }
 0x4a9   :  { %3185 = vmatpush3.bf16.msra.mxu1 %v333_v16  ;;  %v476_v22 = vpop.permute.xlu1 %475 }
 0x4aa   :  { %3196 = vmatprep.subr.bf16.mxu1 %v3635_v15  ;;  %v481_v25 = vsel %vm190_vm2, %v476_v22, 0 }
 0x4ab   :  { %v424_v26 = vpop.permute.xlu0 %423 }
 0x4ad   :  { %v474_v27 = vpop.permute.xlu1 %473 }
 0x4ae   :  { %v3524_v17 = vpop.eup %3523 }
 0x4af   :  { %v321_v18 = vmul.f32 %v3524_v17, %v3520_v7 }
 0x4b0   :  { %v3526_v19 = vpop.eup %3525 }
 0x4b1   :  { %v323_v20 = vmul.f32 %v3526_v19, %v3522_v9  ;;  %v324_v21 = vpack.c.bf16 %v321_v18, %v321_v18 }
 0x4b3   :  { %3187 = vmatmul.mubr.msk.bf16.vlgmr.msra.gmra.mrb[4].mxu1 %vm190_vm2, %v324_v21  ;;  %v325_v24 = vpack.c.bf16 %v323_v20, %v323_v20 }
 0x4b4   :  { %3197 = vmatpush3.bf16.xpose.msra.mxu1 %v431_v23  ;;  %3198 = vmatprep.mubr.msk.bf16.mxu1 %vm3636_vm1, %v3635_v15 }
 0x4b5   :  { %3193 = vmatmul.mubr.msk.bf16.vlgmr.msra.gmra.mrb[8].mxu0 %vm190_vm2, %v325_v24  ;;  %3208 = vmatprep.subr.bf16.mxu1 %v3635_v15 }
 0x4b6   :  { %3203 = vmatpush3.bf16.xpose.msra.mxu0 %v481_v25  ;;  %3204 = vmatprep.mubr.msk.bf16.mxu0 %vm3636_vm1, %v3635_v15 }
 0x4b7   :  { %3214 = vmatprep.subr.bf16.mxu0 %v3635_v15 }
 0x4bb   :  { %3199 = vmatmul.mubr.msk.bf16.vlgmr.msra.gmra.mrb[8].mxu1 %vm190_vm2, %v424_v26 }
 0x4bc   :  { %3210 = vmatprep.mubr.msk.bf16.mxu1 %vm3636_vm1, %v3635_v15 }
 0x4bd   :  { %3205 = vmatmul.mubr.msk.bf16.vlgmr.msra.gmra.mrb[12].mxu0 %vm190_vm2, %v474_v27 }
 0x4be   :  { %3216 = vmatprep.mubr.msk.bf16.mxu0 %vm3636_vm1, %v3635_v15 }
 0x586   :  { %v3867_v28 = vpop.f32.mrb[4].mxu1 }
 0x587   :  { %v3188_v29 = vpop.f32.mrb[5].mxu1 }
 0x588   :  { %v372_v30 = vpop.f32.mrb[6].mxu1  ;;  %v3869_v33 = vpop.f32.mrb[8].mxu0 }
 0x589   :  { %v3189_v34 = vpop.f32.mrb[7].mxu1  ;;  %v3194_v35 = vpop.f32.mrb[9].mxu0 }
 0x58a   :  { %v420_v36 = vpop.f32.mrb[10].mxu0 }
 0x58b   :  { %v3195_v37 = vpop.f32.mrb[11].mxu0 }
 0x58e   :  { %v467_v38 = vpop.f32.mrb[8].mxu1 }
 0x58f   :  { %v523_v40 = vmul.f32 0.35355338, %v467_v38  ;;  %v3200_v41 = vpop.f32.mrb[9].mxu1 }
 0x590   :  { %v470_v43 = vpop.f32.mrb[10].mxu1  ;;  %v517_v44 = vpop.f32.mrb[12].mxu0 }
 0x591   :  { %v524_v45 = vmul.f32 0.35355338, %v517_v44  ;;  %v3201_v46 = vpop.f32.mrb[11].mxu1  ;;  %v3206_v47 = vpop.f32.mrb[13].mxu0  ;;  %v525_v49 = vadd.f32 %v3822_v48, %v523_v40 }
 0x592   :  { %v520_v50 = vpop.f32.mrb[14].mxu0 }
 0x593   :  { %v3207_v51 = vpop.f32.mrb[15].mxu0  ;;  %v527_v52 = vsel %vm190_vm2, %v525_v49, -inf  ;;  %v526_v54 = vadd.f32 %v3827_v53, %v524_v45 }
 0x594   :  { %528 = vmax.xlane.f32.xlu0 %v527_v52 }
 0x595   :  { %v530_v55 = vsel %vm190_vm2, %v526_v54, -inf }
 0x596   :  { %531 = vmax.xlane.f32.xlu1 %v530_v55 }
 0x5a7   :  { %599 = vrot.lane.b32.xlu1 %v3801_v42, %s3641_s0 }
 0x5ab   :  { %649 = vrot.lane.b32.xlu1 %v3799_v39, %s4410_s21 }
 0x5af   :  { %699 = vrot.lane.b32.xlu1 %v3801_v42, %s4410_s21 }
 0x5b3   :  { %697 = vrot.lane.b32.xlu1 %v3801_v42, %s4408_s1 }
 0x621   :  { %v529_v56 = vpop.xlane.xlu0 %528 }
 0x622   :  { %v533_v57 = vsub.f32 %v525_v49, %v529_v56 }
 0x623   :  { %v532_v58 = vpop.xlane.xlu1 %531 }
 0x624   :  { %v535_v59 = vmul.f32 1.442695, %v533_v57  ;;  %v534_v60 = vsub.f32 %v526_v54, %v532_v58 }
 0x626   :  { %3527 = vpow2.f32 %v535_v59  ;;  %v537_v61 = vmul.f32 1.442695, %v534_v60 }
 0x627   :  { %v600_v62 = vpop.permute.xlu1 %599 }
 0x628   :  { %3529 = vpow2.f32 %v537_v61  ;;  %v605_v63 = vsel %vm331_vm3, %v600_v62, 0 }
 0x629   :  { %3215 = vmatpush3.bf16.msra.mxu0 %v605_v63 }
 0x62a   :  { %3226 = vmatprep.subr.bf16.mxu0 %v3635_v15 }
 0x62b   :  { %v650_v9 = vpop.permute.xlu1 %649 }
 0x62c   :  { %v655_v16 = vsel %vm190_vm2, %v650_v9, 0 }
 0x62f   :  { %v700_v14 = vpop.permute.xlu1 %699 }
 0x630   :  { %v3528_v0 = vpop.eup %3527  ;;  %v705_v18 = vsel %vm190_vm2, %v700_v14, 0 }
 0x631   :  { %v539_v1 = vsel %vm190_vm2, %v3528_v0, 0.0 }
 0x632   :  { %v3530_v2 = vpop.eup %3529  ;;  %540 = vadd.xlane.f32.xlu0 %v539_v1 }
 0x633   :  { %v542_v3 = vsel %vm190_vm2, %v3530_v2, 0.0  ;;  %v698_v20 = vpop.permute.xlu1 %697 }
 0x636   :  { %543 = vadd.xlane.f32.xlu0 %v542_v3 }
 0x64c   :  { %551 = vrot.lane.b32.xlu0 %v3799_v39, %s3641_s0 }
 0x650   :  { %647 = vrot.lane.b32.xlu0 %v3799_v39, %s4408_s1 }
 0x6bf   :  { %v541_v4 = vpop.xlane.xlu0 %540 }
 0x6c0   :  { %3531 = vrcp.f32 %v541_v4 }
 0x6c3   :  { %v544_v5 = vpop.xlane.xlu0 %543 }
 0x6c4   :  { %3533 = vrcp.f32 %v544_v5 }
 0x6c7   :  { %v552_v6 = vpop.permute.xlu0 %551 }
 0x6c8   :  { %v557_v7 = vsel %vm331_vm3, %v552_v6, 0 }
 0x6c9   :  { %3209 = vmatpush3.bf16.msra.mxu1 %v557_v7 }
 0x6ca   :  { %v3532_v8 = vpop.eup %3531  ;;  %3220 = vmatprep.subr.bf16.mxu1 %v3635_v15 }
 0x6cb   :  { %v546_v10 = vmul.f32 %v3532_v8, %v3528_v0  ;;  %v648_v19 = vpop.permute.xlu0 %647 }
 0x6cd   :  { %v549_v11 = vpack.c.bf16 %v546_v10, %v546_v10 }
 0x6ce   :  { %v3534_v12 = vpop.eup %3533 }
 0x6cf   :  { %v548_v13 = vmul.f32 %v3534_v12, %v3530_v2  ;;  %3211 = vmatmul.mubr.msk.bf16.vlgmr.msra.gmra.mrb[12].mxu1 %vm190_vm2, %v549_v11 }
 0x6d0   :  { %3222 = vmatprep.mubr.msk.bf16.mxu1 %vm3636_vm1, %v3635_v15 }
 0x6d1   :  { %v550_v17 = vpack.c.bf16 %v548_v13, %v548_v13 }
 0x6d2   :  { %3221 = vmatpush3.bf16.xpose.msra.mxu1 %v655_v16 }
 0x6d3   :  { %3217 = vmatmul.mubr.msk.bf16.vlgmr.msra.gmra.mrb[16].mxu0 %vm190_vm2, %v550_v17  ;;  %3232 = vmatprep.subr.bf16.mxu1 %v3635_v15 }
 0x6d4   :  { %3227 = vmatpush3.bf16.xpose.msra.mxu0 %v705_v18  ;;  %3228 = vmatprep.mubr.msk.bf16.mxu0 %vm3636_vm1, %v3635_v15 }
 0x6d5   :  { %3238 = vmatprep.subr.bf16.mxu0 %v3635_v15 }
 0x6d9   :  { %3223 = vmatmul.mubr.msk.bf16.vlgmr.msra.gmra.mrb[16].mxu1 %vm190_vm2, %v648_v19 }
 0x6da   :  { %3234 = vmatprep.mubr.msk.bf16.mxu1 %vm3636_vm1, %v3635_v15 }
 0x6db   :  { %3229 = vmatmul.mubr.msk.bf16.vlgmr.msra.gmra.mrb[20].mxu0 %vm190_vm2, %v698_v20 }
 0x6dc   :  { %3240 = vmatprep.mubr.msk.bf16.mxu0 %vm3636_vm1, %v3635_v15 }
 0x7a2   :  { %v3909_v21 = vpop.f32.mrb[12].mxu1 }
 0x7a3   :  { %v3212_v22 = vpop.f32.mrb[13].mxu1 }
 0x7a4   :  { %v596_v23 = vpop.f32.mrb[14].mxu1 }
 0x7a5   :  { %v3213_v24 = vpop.f32.mrb[15].mxu1 }
 0x7a6   :  { %v3911_v25 = vpop.f32.mrb[16].mxu0 }
 0x7a7   :  { %v3461_v26 = vpack.i.bf16 %v3911_v25, %v3909_v21  ;;  %v3218_v27 = vpop.f32.mrb[17].mxu0 }
 0x7a8   :  { %v644_v29 = vpop.f32.mrb[18].mxu0 }
 0x7a9   :  { %v3219_v30 = vpop.f32.mrb[19].mxu0 }
 0x7ac   :  { %v691_v34 = vpop.f32.mrb[16].mxu1 }
 0x7ad   :  { %v747_v35 = vmul.f32 0.35355338, %v691_v34  ;;  %v3224_v36 = vpop.f32.mrb[17].mxu1 }
 0x7ae   :  { %v694_v37 = vpop.f32.mrb[18].mxu1  ;;  %v741_v38 = vpop.f32.mrb[20].mxu0 }
 0x7af   :  { %v748_v40 = vmul.f32 0.35355338, %v741_v38  ;;  %v3225_v41 = vpop.f32.mrb[19].mxu1  ;;  %v3230_v43 = vpop.f32.mrb[21].mxu0  ;;  %v749_v44 = vadd.f32 %v3822_v48, %v747_v35 }
 0x7b0   :  { %v744_v45 = vpop.f32.mrb[22].mxu0 }
 0x7b1   :  { %v3231_v46 = vpop.f32.mrb[23].mxu0  ;;  %v751_v47 = vsel %vm190_vm2, %v749_v44, -inf  ;;  %v750_v49 = vadd.f32 %v3827_v53, %v748_v40 }
 0x7b2   :  { %752 = vmax.xlane.f32.xlu0 %v751_v47 }
 0x7b3   :  { %v754_v50 = vsel %vm190_vm2, %v750_v49, -inf }
 0x7b4   :  { %755 = vmax.xlane.f32.xlu1 %v754_v50 }
 0x7c5   :  { %823 = vrot.lane.b32.xlu1 %v3801_v42, %s4406_s22 }
 0x7c9   :  { %873 = vrot.lane.b32.xlu1 %v3799_v39, %s4404_s23 }
 0x7cd   :  { %923 = vrot.lane.b32.xlu1 %v3801_v42, %s4404_s23  ;;  %s4429_s23 = smov 16  }
 0x7d1   :  { %921 = vrot.lane.b32.xlu1 %v3801_v42, %s4401_s2 }
 0x83f   :  { %v753_v51 = vpop.xlane.xlu0 %752 }
 0x840   :  { %v757_v52 = vsub.f32 %v749_v44, %v753_v51 }
 0x841   :  { %v756_v54 = vpop.xlane.xlu1 %755 }
 0x842   :  { %v759_v55 = vmul.f32 1.442695, %v757_v52  ;;  %v758_v56 = vsub.f32 %v750_v49, %v756_v54 }
 0x844   :  { %3535 = vpow2.f32 %v759_v55  ;;  %v761_v57 = vmul.f32 1.442695, %v758_v56 }
 0x845   :  { %v824_v58 = vpop.permute.xlu1 %823 }
 0x846   :  { %3537 = vpow2.f32 %v761_v57  ;;  %v829_v59 = vsel %vm331_vm3, %v824_v58, 0 }
 0x847   :  { %3239 = vmatpush3.bf16.msra.mxu0 %v829_v59 }
 0x848   :  { %3250 = vmatprep.subr.bf16.mxu0 %v3635_v15 }
 0x849   :  { %v874_v5 = vpop.permute.xlu1 %873 }
 0x84a   :  { %v879_v11 = vsel %vm190_vm2, %v874_v5, 0 }
 0x84d   :  { %v924_v10 = vpop.permute.xlu1 %923 }
 0x84e   :  { %v3536_v60 = vpop.eup %3535  ;;  %v929_v13 = vsel %vm190_vm2, %v924_v10, 0 }
 0x84f   :  { %v763_v61 = vsel %vm190_vm2, %v3536_v60, 0.0 }
 0x850   :  { %v3538_v62 = vpop.eup %3537  ;;  %764 = vadd.xlane.f32.xlu0 %v763_v61 }
 0x851   :  { %v766_v63 = vsel %vm190_vm2, %v3538_v62, 0.0  ;;  %v922_v16 = vpop.permute.xlu1 %921 }
 0x854   :  { %767 = vadd.xlane.f32.xlu0 %v766_v63 }
 0x86a   :  { %775 = vrot.lane.b32.xlu0 %v3799_v39, %s4406_s22  ;;  %s4428_s22 = smov 8  }
 0x86e   :  { %871 = vrot.lane.b32.xlu0 %v3799_v39, %s4401_s2 }
 0x8dd   :  { %v765_v0 = vpop.xlane.xlu0 %764 }
 0x8de   :  { %3539 = vrcp.f32 %v765_v0 }
 0x8e1   :  { %v768_v1 = vpop.xlane.xlu0 %767 }
 0x8e2   :  { %3541 = vrcp.f32 %v768_v1 }
 0x8e5   :  { %v776_v2 = vpop.permute.xlu0 %775 }
 0x8e6   :  { %v781_v3 = vsel %vm331_vm3, %v776_v2, 0  ;;  %v3493_v2 = vld [vmem:[%s4379_s6] sm:$0xff]  }
 0x8e7   :  { %3233 = vmatpush3.bf16.msra.mxu1 %v781_v3  ;;  %v3494_v3 = vld [vmem:[%s4379_s6 + $0x8] sm:$0xff]  }
 0x8e8   :  { %v3540_v4 = vpop.eup %3539  ;;  %3244 = vmatprep.subr.bf16.mxu1 %v3635_v15 }
 0x8e9   :  { %v770_v6 = vmul.f32 %v3540_v4, %v3536_v60  ;;  %v872_v14 = vpop.permute.xlu0 %871 }
 0x8eb   :  { %v773_v7 = vpack.c.bf16 %v770_v6, %v770_v6 }
 0x8ec   :  { %v3542_v8 = vpop.eup %3541 }
 0x8ed   :  { %v772_v9 = vmul.f32 %v3542_v8, %v3538_v62  ;;  %3235 = vmatmul.mubr.msk.bf16.vlgmr.msra.gmra.mrb[20].mxu1 %vm190_vm2, %v773_v7 }
 0x8ee   :  { %3246 = vmatprep.mubr.msk.bf16.mxu1 %vm3636_vm1, %v3635_v15 }
 0x8ef   :  { %v774_v12 = vpack.c.bf16 %v772_v9, %v772_v9 }
 0x8f0   :  { %3245 = vmatpush3.bf16.xpose.msra.mxu1 %v879_v11 }
 0x8f1   :  { %3241 = vmatmul.mubr.msk.bf16.vlgmr.msra.gmra.mrb[24].mxu0 %vm190_vm2, %v774_v12  ;;  %3256 = vmatprep.subr.bf16.mxu1 %v3635_v15 }
 0x8f2   :  { %3251 = vmatpush3.bf16.xpose.msra.mxu0 %v929_v13  ;;  %3252 = vmatprep.mubr.msk.bf16.mxu0 %vm3636_vm1, %v3635_v15 }
 0x8f3   :  { %3262 = vmatprep.subr.bf16.mxu0 %v3635_v15 }
 0x8f7   :  { %3247 = vmatmul.mubr.msk.bf16.vlgmr.msra.gmra.mrb[24].mxu1 %vm190_vm2, %v872_v14 }
 0x8f8   :  { %3258 = vmatprep.mubr.msk.bf16.mxu1 %vm3636_vm1, %v3635_v15 }
 0x8f9   :  { %3253 = vmatmul.mubr.msk.bf16.vlgmr.msra.gmra.mrb[28].mxu0 %vm190_vm2, %v922_v16 }
 0x8fa   :  { %3264 = vmatprep.mubr.msk.bf16.mxu0 %vm3636_vm1, %v3635_v15 }
 0x9c0   :  { %v817_v17 = vpop.f32.mrb[20].mxu1 }
 0x9c1   :  { %v3236_v18 = vpop.f32.mrb[21].mxu1 }
 0x9c2   :  { %v820_v19 = vpop.f32.mrb[22].mxu1 }
 0x9c3   :  { %v3237_v20 = vpop.f32.mrb[23].mxu1 }
 0x9c4   :  { %v865_v22 = vpop.f32.mrb[24].mxu0 }
 0x9c5   :  { %v3466_v23 = vpack.i.bf16 %v865_v22, %v817_v17  ;;  %v3242_v24 = vpop.f32.mrb[25].mxu0 }
 0x9c6   :  { %v868_v27 = vpop.f32.mrb[26].mxu0 }
 0x9c7   :  { %v3243_v29 = vpop.f32.mrb[27].mxu0 }
 0x9ca   :  { %v915_v30 = vpop.f32.mrb[24].mxu1 }
 0x9cb   :  { %v971_v34 = vmul.f32 0.35355338, %v915_v30  ;;  %v3248_v35 = vpop.f32.mrb[25].mxu1 }
 0x9cc   :  { %v918_v36 = vpop.f32.mrb[26].mxu1  ;;  %v965_v37 = vpop.f32.mrb[28].mxu0 }
 0x9cd   :  { %v972_v38 = vmul.f32 0.35355338, %v965_v37  ;;  %v3249_v40 = vpop.f32.mrb[27].mxu1  ;;  %v3254_v41 = vpop.f32.mrb[29].mxu0  ;;  %v973_v43 = vadd.f32 %v3822_v48, %v971_v34 }
 0x9ce   :  { %v968_v44 = vpop.f32.mrb[30].mxu0 }
 0x9cf   :  { %v3255_v45 = vpop.f32.mrb[31].mxu0  ;;  %v975_v46 = vsel %vm190_vm2, %v973_v43, -inf  ;;  %v974_v47 = vadd.f32 %v3827_v53, %v972_v38 }
 0x9d0   :  { %976 = vmax.xlane.f32.xlu0 %v975_v46 }
 0x9d1   :  { %v978_v49 = vsel %vm190_vm2, %v974_v47, -inf }
 0x9d2   :  { %979 = vmax.xlane.f32.xlu1 %v978_v49 }
 0x9e3   :  { %1047 = vrot.lane.b32.xlu1 %v3801_v42, %s4399_s25 }
 0x9e7   :  { %3462 = vrot.lane.b32.xlu1 %v3461_v26, %s4398_s27  ;;  %s4403_s27 = smov 24  }
 0x9eb   :  { %3467 = vrot.lane.b32.xlu1 %v3466_v23, %s4397_s28 }
 0xa5d   :  { %v977_v48 = vpop.xlane.xlu0 %976 }
 0xa5e   :  { %v981_v50 = vsub.f32 %v973_v43, %v977_v48 }
 0xa5f   :  { %v980_v53 = vpop.xlane.xlu1 %979 }
 0xa60   :  { %v983_v51 = vmul.f32 1.442695, %v981_v50  ;;  %v982_v52 = vsub.f32 %v974_v47, %v980_v53 }
 0xa62   :  { %3543 = vpow2.f32 %v983_v51  ;;  %v985_v54 = vmul.f32 1.442695, %v982_v52 }
 0xa63   :  { %v1048_v55 = vpop.permute.xlu1 %1047 }
 0xa64   :  { %3545 = vpow2.f32 %v985_v54  ;;  %v1053_v42 = vsel %vm331_vm3, %v1048_v55, 0 }
 0xa65   :  { %3263 = vmatpush3.bf16.msra.mxu0 %v1053_v42 }
 0xa66   :  { %3276 = vmatprep.subr.bf16.mxu0 %v3635_v15 }
 0xa67   :  { %v3463_v13 = vpop.permute.xlu1 %3462 }
 0xa68   :  { %v3465_v16 = vunpack.i.h.bf16 %v3463_v13  ;;  %v3464_v17 = vunpack.i.l.bf16 %v3463_v13 }
 0xa6a   :  { %v1120_v22 = vsel %vm190_vm2, %v3869_v33, %v3465_v16  ;;  %v1119_v23 = vsel %vm190_vm2, %v3867_v28, %v3464_v17  ;;  %v2974_v28 = vld [vmem:[%s4380_s7] ss:$0 sm:$0xff] }
 0xa6b   :  { %v3468_v14 = vpop.permute.xlu1 %3467 }
 0xa6c   :  { %v3544_v56 = vpop.eup %3543  ;;  %v3470_v18 = vunpack.i.h.bf16 %v3468_v14  ;;  %v3469_v19 = vunpack.i.l.bf16 %v3468_v14 }
 0xa6d   :  { %v987_v21 = vsel %vm190_vm2, %v3544_v56, 0.0 }
 0xa6e   :  { %v3546_v25 = vpop.eup %3545  ;;  %988 = vadd.xlane.f32.xlu0 %v987_v21  ;;  %v1122_v29 = vsel %vm1121_vm4, %v1119_v23, %v3469_v19  ;;  %v1123_v30 = vsel %vm1121_vm4, %v1120_v22, %v3470_v18 }
 0xa6f   :  { %v990_v26 = vsel %vm190_vm2, %v3546_v25, 0.0 }
 0xa72   :  { %991 = vadd.xlane.f32.xlu0 %v990_v26 }
 0xa88   :  { %999 = vrot.lane.b32.xlu0 %v3799_v39, %s4399_s25  ;;  %s4427_s25 = smov 40  }
 0xafb   :  { %v989_v57 = vpop.xlane.xlu0 %988 }
 0xafc   :  { %3547 = vrcp.f32 %v989_v57 }
 0xaff   :  { %v992_v58 = vpop.xlane.xlu0 %991 }
 0xb00   :  { %3549 = vrcp.f32 %v992_v58 }
 0xb03   :  { %v1000_v59 = vpop.permute.xlu0 %999 }
 0xb04   :  { %v1005_v60 = vsel %vm331_vm3, %v1000_v59, 0 }
 0xb05   :  { %3257 = vmatpush3.bf16.msra.mxu1 %v1005_v60 }
 0xb06   :  { %v3548_v61 = vpop.eup %3547  ;;  %3268 = vmatprep.subr.bf16.mxu1 %v3635_v15 }
 0xb07   :  { %v994_v62 = vmul.f32 %v3548_v61, %v3544_v56  ;;  %v3496_v56 = vld [vmem:[%s4383_s10 + $0x8] sm:$0xff]  }
 0xb09   :  { %v997_v63 = vpack.c.bf16 %v994_v62, %v994_v62  ;;  %v2978_v62 = vld [vmem:[%s4381_s8] ss:$0 sm:$0xff] }
 0xb0a   :  { %v3550_v0 = vpop.eup %3549 }
 0xb0b   :  { %v996_v1 = vmul.f32 %v3550_v0, %v3546_v25  ;;  %3259 = vmatmul.mubr.msk.bf16.vlgmr.msra.gmra.mrb[28].mxu1 %vm190_vm2, %v997_v63 }
 0xb0c   :  { %3272 = vmatprep.mubr.msk.bf16.mxu1 %vm3636_vm1, %v3635_v15  ;;  %3269 = vmatpush3.bf16.msra.mxu1 %v3493_v2 }
 0xb0d   :  { %v998_v39 = vpack.c.bf16 %v996_v1, %v996_v1  ;;  %3270 = vmatprep.subr.bf16.mxu1 %v3635_v15 }
 0xb0f   :  { %3265 = vmatmul.mubr.msk.bf16.vlgmr.msra.gmra.mrb[32].mxu0 %vm190_vm2, %v998_v39  ;;  %v2979_v39 = vld [vmem:[%s4382_s9] ss:$0 sm:$0xff] }
 0xb10   :  { %3280 = vmatprep.mubr.msk.bf16.mxu0 %vm3636_vm1, %v3635_v15  ;;  %3271 = vmatpush3.bf16.msra.mxu1 %v3494_v3 }
 0xb11   :  { %3284 = vmatprep.subr.bf16.mxu1 %v3635_v15 }
 0xbde   :  { %v1041_v4 = vpop.f32.mrb[28].mxu1 }
 0xbdf   :  { %v3260_v5 = vpop.f32.mrb[29].mxu1 }
 0xbe0   :  { %v1044_v6 = vpop.f32.mrb[30].mxu1 }
 0xbe1   :  { %v3261_v7 = vpop.f32.mrb[31].mxu1  ;;  %v3497_v6 = vld [vmem:[%s4385_s12] sm:$0xff]  }
 0xbe2   :  { %v1089_v8 = vpop.f32.mrb[32].mxu0  ;;  %v3498_v7 = vld [vmem:[%s4385_s12 + $0x8] sm:$0xff]  }
 0xbe3   :  { %v3471_v9 = vpack.i.bf16 %v1089_v8, %v1041_v4  ;;  %v3266_v10 = vpop.f32.mrb[33].mxu0  ;;  %v3499_v8 = vld [vmem:[%s4385_s12 + $0x10] sm:$0xff]  }
 0xbe4   :  { %v1092_v11 = vpop.f32.mrb[34].mxu0  ;;  %v2980_v10 = vld [vmem:[%s4384_s11] ss:$0 sm:$0xff] }
 0xbe5   :  { %3472 = vrot.lane.b32.xlu0 %v3471_v9, %s4403_s27  ;;  %v3267_v12 = vpop.f32.mrb[35].mxu0  ;;  %v3500_v9 = vld [vmem:[%s4385_s12 + $0x18] sm:$0xff]  }
 0xc57   :  { %v3473_v20 = vpop.permute.xlu0 %3472 }
 0xc58   :  { %v3475_v24 = vunpack.i.h.bf16 %v3473_v20  ;;  %v3474_v27 = vunpack.i.l.bf16 %v3473_v20 }
 0xc5a   :  { %v1126_v34 = vsel %vm1124_vm5, %v1123_v30, %v3475_v24  ;;  %v1125_v35 = vsel %vm1124_vm5, %v1122_v29, %v3474_v27 }
 0xc5b   :  { %v1131_v36 = vpack.c.bf16 %v1126_v34, %v1125_v35 }
 0xc5d   :  { %3273 = vmatmul.mubr.msk.bf16.vlgmr.msra.gmra.mrb[32].mxu1 %vm71_vm0, %v1131_v36 }
 0xc5e   :  { %3292 = vmatprep.mubr.msk.bf16.mxu1 %vm3636_vm1, %v3635_v15  ;;  %3285 = vmatpush3.bf16.msra.mxu1 %v3497_v6 }
 0xc5f   :  { %3286 = vmatprep.subr.bf16.mxu1 %v3635_v15 }
 0xc62   :  { %3287 = vmatpush3.bf16.msra.mxu1 %v3498_v7 }
 0xc63   :  { %3288 = vmatprep.subr.bf16.mxu1 %v3635_v15 }
 0xc66   :  { %3289 = vmatpush3.bf16.msra.mxu1 %v3499_v8  ;;  %v2991_v8 = vld [vmem:[%s4388_s15] ss:$0 sm:$0xff] }
 0xc67   :  { %3290 = vmatprep.subr.bf16.mxu1 %v3635_v15 }
 0xc6a   :  { %3291 = vmatpush3.bf16.msra.mxu1 %v3500_v9 }
 0xc6b   :  { %3310 = vmatprep.subr.bf16.mxu1 %v3635_v15 }
 0xd30   :  { %v1188_v33 = vpop.f32.mrb[32].mxu1 }
 0xd31   :  { %v1189_v37 = vadd.f32 %v2974_v28, %v1188_v33  ;;  %v3274_v38 = vpop.f32.mrb[33].mxu1 }
 0xd32   :  { %v1191_v40 = vpop.f32.mrb[34].mxu1 }
 0xd33   :  { %v1192_v41 = vadd.f32 %v2974_v28, %v1191_v40  ;;  %v3275_v43 = vpop.f32.mrb[35].mxu1  ;;  %v1195_v44 = vadd.f32 %v1189_v37, %v3787_v31 }
 0xd35   :  { %v1199_v45 = vsel %vm71_vm0, %v1195_v44, 0.0  ;;  %v1196_v46 = vadd.f32 %v1192_v41, %v3789_v32  ;;  %v3495_v32 = vld [vmem:[%s4383_s10] sm:$0xff]  }
 0xd36   :  { %1200 = vadd.xlane.f32.xlu1 %v1199_v45  ;;  %3277 = vmatpush3.bf16.msra.mxu0 %v3495_v32 }
 0xd37   :  { %v1202_v47 = vsel %vm71_vm0, %v1196_v46, 0.0  ;;  %3278 = vmatprep.subr.bf16.mxu0 %v3635_v15 }
 0xd38   :  { %1203 = vadd.xlane.f32.xlu0 %v1202_v47 }
 0xd3a   :  { %3279 = vmatpush3.bf16.msra.mxu0 %v3496_v56 }
 0xd3b   :  { %3296 = vmatprep.subr.bf16.mxu0 %v3635_v15 }
 0xdc3   :  { %v1201_v49 = vpop.xlane.xlu1 %1200 }
 0xdc4   :  { %v1205_v48 = vmul.f32 0.03125, %v1201_v49 }
 0xdc5   :  { %v1204_v50 = vpop.xlane.xlu0 %1203 }
 0xdc6   :  { %v1207_v53 = vsub.f32 %v1195_v44, %v1205_v48  ;;  %v1206_v51 = vmul.f32 0.03125, %v1204_v50  ;;  %v2984_v44 = vld [vmem:[%s4386_s13] ss:$0 sm:$0xff] }
 0xdc8   :  { %v1208_v52 = vsub.f32 %v1196_v46, %v1206_v51  ;;  %v1209_v54 = vmul.f32 %v1207_v53, %v1207_v53 }
 0xdca   :  { %v1211_v55 = vsel %vm71_vm0, %v1209_v54, 0.0  ;;  %v1210_v42 = vmul.f32 %v1208_v52, %v1208_v52 }
 0xdcb   :  { %1212 = vadd.xlane.f32.xlu0 %v1211_v55 }
 0xdcc   :  { %v1214_v31 = vsel %vm71_vm0, %v1210_v42, 0.0 }
 0xdcf   :  { %1215 = vadd.xlane.f32.xlu0 %v1214_v31 }
 0xe58   :  { %v1213_v21 = vpop.xlane.xlu0 %1212 }
 0xe59   :  { %v1217_v25 = vmul.f32 0.03125, %v1213_v21 }
 0xe5b   :  { %v1219_v26 = vadd.f32 1e-12, %v1217_v25 }
 0xe5c   :  { %v1216_v57 = vpop.xlane.xlu0 %1215 }
 0xe5d   :  { %3551 = vrsqrt.f32 %v1219_v26  ;;  %v1218_v58 = vmul.f32 0.03125, %v1216_v57 }
 0xe5f   :  { %v1220_v59 = vadd.f32 1e-12, %v1218_v58 }
 0xe61   :  { %3553 = vrsqrt.f32 %v1220_v59  ;;  %v3501_v59 = vld [vmem:[%s4418_s26 + $0x10] sm:$0xff]  }
 0xe67   :  { %v3552_v60 = vpop.eup %3551 }
 0xe68   :  { %v1223_v61 = vmul.f32 %v3552_v60, %v1207_v53  ;;  %v3502_v60 = vld [vmem:[%s4418_s26 + $0x18] sm:$0xff]  }
 0xe6a   :  { %v1231_v0 = vmul.f32 %v2978_v62, %v1223_v61 }
 0xe6b   :  { %v3554_v63 = vpop.eup %3553 }
 0xe6c   :  { %v1224_v1 = vmul.f32 %v3554_v63, %v1208_v52  ;;  %v1239_v3 = vadd.f32 %v2979_v39, %v1231_v0 }
 0xe6e   :  { %v1232_v2 = vmul.f32 %v2978_v62, %v1224_v1 }
 0xe70   :  { %v1240_v4 = vadd.f32 %v2979_v39, %v1232_v2 }
 0xe72   :  { %v1245_v5 = vpack.c.bf16 %v1240_v4, %v1239_v3 }
 0xe74   :  { %3281 = vmatmul.mubr.msk.bf16.vlgmr.msra.gmra.mrb[36].mxu0 %vm71_vm0, %v1245_v5 }
 0xe75   :  { %3300 = vmatprep.mubr.msk.bf16.mxu0 %vm3636_vm1, %v3635_v15  ;;  %3297 = vmatpush3.bf16.msra.mxu0 %v3501_v59 }
 0xe76   :  { %3298 = vmatprep.subr.bf16.mxu0 %v3635_v15 }
 0xe79   :  { %3299 = vmatpush3.bf16.msra.mxu0 %v3502_v60 }
 0xe7a   :  { %3304 = vmatprep.subr.bf16.mxu0 %v3635_v15 }
 0xf47   :  { %v1302_v11 = vpop.f32.mrb[36].mxu0 }
 0xf48   :  { %v1303_v12 = vadd.f32 %v2980_v10, %v1302_v11  ;;  %v3282_v13 = vpop.f32.mrb[37].mxu0 }
 0xf49   :  { %v1305_v14 = vpop.f32.mrb[38].mxu0  ;;  %v2997_v13 = vld [vmem:[%s4378_s5 + $0x1] ss:$0 sm:$0xff]  ;;  %s4430_s5 = smov 24  }
 0xf4a   :  { %v1311_v16 = vmul.f32 0.044715, %v1303_v12  ;;  %v1306_v17 = vadd.f32 %v2980_v10, %v1305_v14  ;;  %v3283_v18 = vpop.f32.mrb[39].mxu0  ;;  %v1309_v33 = vmul.f32 0.5, %v1303_v12 }
 0xf4c   :  { %v1313_v19 = vmul.f32 %v1311_v16, %v1303_v12  ;;  %v1312_v20 = vmul.f32 0.044715, %v1306_v17  ;;  %v1310_v37 = vmul.f32 0.5, %v1306_v17 }
 0xf4e   :  { %v1315_v22 = vmul.f32 %v1313_v19, %v1303_v12  ;;  %v1314_v23 = vmul.f32 %v1312_v20, %v1306_v17 }
 0xf50   :  { %v1317_v24 = vadd.f32 %v1315_v22, %v1303_v12  ;;  %v1316_v27 = vmul.f32 %v1314_v23, %v1306_v17 }
 0xf52   :  { %v1319_v29 = vmul.f32 0.7978846, %v1317_v24  ;;  %v1318_v30 = vadd.f32 %v1316_v27, %v1306_v17 }
 0xf54   :  { %3555 = vtanh.f32 %v1319_v29  ;;  %v1320_v34 = vmul.f32 0.7978846, %v1318_v30 }
 0xf56   :  { %3557 = vtanh.f32 %v1320_v34 }
 0xf5e   :  { %v3556_v35 = vpop.eup %3555 }
 0xf5f   :  { %v1323_v36 = vadd.f32 1.0, %v3556_v35 }
 0xf60   :  { %v3558_v28 = vpop.eup %3557 }
 0xf61   :  { %v1324_v38 = vadd.f32 1.0, %v3558_v28  ;;  %v1325_v40 = vmul.f32 %v1323_v36, %v1309_v33 }
 0xf63   :  { %v1326_v41 = vmul.f32 %v1324_v38, %v1310_v37 }
 0xf65   :  { %v1335_v43 = vpack.c.bf16 %v1326_v41, %v1325_v40  ;;  %v4102_v41 = vld [vmem:[%s4421_s3] ss:$0 sm:$0xff] }
 0xf67   :  { %3293 = vmatmul.mubr.msk.bf16.vlgmr.msra.gmra.mrb[36].mxu1 %vm1367_vm6, %v1335_v43 }
 0xf68   :  { %3312 = vmatprep.mubr.msk.bf16.mxu1 %vm3636_vm1, %v3635_v15 }
0x103a   :  { %v1405_v45 = vpop.f32.mrb[36].mxu1 }
0x103b   :  { %v1406_v46 = vadd.f32 %v2984_v44, %v1405_v45  ;;  %v3294_v47 = vpop.f32.mrb[37].mxu1 }
0x103c   :  { %v1408_v49 = vpop.f32.mrb[38].mxu1  ;;  %v4109_v47 = vld [vmem:[%s4421_s3 + $0x1] ss:$0 sm:$0xff]  ;;  %s4422_s3 = smov 80  }
0x103d   :  { %v1409_v48 = vadd.f32 %v2984_v44, %v1408_v49  ;;  %v3295_v50 = vpop.f32.mrb[39].mxu1  ;;  %v1412_v53 = vadd.f32 %v1406_v46, %v1239_v3  ;;  %v2990_v3 = vld [vmem:[%s4387_s14] ss:$0 sm:$0xff] }
0x103f   :  { %v1416_v51 = vsel %vm71_vm0, %v1412_v53, 0.0  ;;  %v1413_v52 = vadd.f32 %v1409_v48, %v1240_v4 }
0x1040   :  { %1417 = vadd.xlane.f32.xlu1 %v1416_v51 }
0x1041   :  { %v1419_v54 = vsel %vm71_vm0, %v1413_v52, 0.0 }
0x1042   :  { %1420 = vadd.xlane.f32.xlu0 %v1419_v54 }
0x10cd   :  { %v1418_v55 = vpop.xlane.xlu1 %1417 }
0x10ce   :  { %v1422_v42 = vmul.f32 0.03125, %v1418_v55 }
0x10cf   :  { %v1421_v31 = vpop.xlane.xlu0 %1420 }
0x10d0   :  { %v1424_v32 = vsub.f32 %v1412_v53, %v1422_v42  ;;  %v1423_v56 = vmul.f32 0.03125, %v1421_v31 }
0x10d2   :  { %v1425_v21 = vsub.f32 %v1413_v52, %v1423_v56  ;;  %v1426_v25 = vmul.f32 %v1424_v32, %v1424_v32 }
0x10d4   :  { %v1428_v26 = vsel %vm71_vm0, %v1426_v25, 0.0  ;;  %v1427_v57 = vmul.f32 %v1425_v21, %v1425_v21 }
0x10d5   :  { %1429 = vadd.xlane.f32.xlu1 %v1428_v26 }
0x10d6   :  { %v1431_v58 = vsel %vm71_vm0, %v1427_v57, 0.0 }
0x10d7   :  { %1432 = vadd.xlane.f32.xlu0 %v1431_v58 }
0x1162   :  { %v1430_v61 = vpop.xlane.xlu1 %1429 }
0x1163   :  { %v1434_v62 = vmul.f32 0.03125, %v1430_v61 }
0x1164   :  { %v1433_v63 = vpop.xlane.xlu0 %1432 }
0x1165   :  { %v1436_v0 = vadd.f32 1e-12, %v1434_v62  ;;  %v1435_v1 = vmul.f32 0.03125, %v1433_v63 }
0x1167   :  { %3559 = vrsqrt.f32 %v1436_v0  ;;  %v1437_v39 = vadd.f32 1e-12, %v1435_v1 }
0x1169   :  { %3561 = vrsqrt.f32 %v1437_v39 }
0x1171   :  { %v3560_v2 = vpop.eup %3559 }
0x1172   :  { %v1440_v4 = vmul.f32 %v3560_v2, %v1424_v32 }
0x1173   :  { %v3562_v5 = vpop.eup %3561 }
0x1174   :  { %v1448_v6 = vmul.f32 %v2990_v3, %v1440_v4  ;;  %v1441_v7 = vmul.f32 %v3562_v5, %v1425_v21 }
0x1176   :  { %v1449_v9 = vmul.f32 %v2990_v3, %v1441_v7  ;;  %v4067_v10 = vadd.f32 %v2991_v8, %v1448_v6 }
0x1178   :  { %v4069_v11 = vadd.f32 %v2991_v8, %v1449_v9 }
0x117a   :  { %v1463_v12 = vpack.c.bf16 %v4069_v11, %v4067_v10 }
0x117c   :  { %3301 = vmatmul.mubr.msk.bf16.vlgmr.msra.gmra.mrb[40].mxu0 %vm71_vm0, %v1463_v12 }
0x117d   :  { %3306 = vmatprep.mubr.msk.bf16.mxu0 %vm3636_vm1, %v3635_v15 }
0x124f   :  { %v1521_v14 = vpop.f32.mrb[40].mxu0 }
0x1250   :  { %v1522_v16 = vadd.f32 %v2997_v13, %v1521_v14  ;;  %v3302_v17 = vpop.f32.mrb[41].mxu0 }
0x1251   :  { %v1524_v18 = vpop.f32.mrb[42].mxu0 }
0x1252   :  { %v4079_v19 = vpack.c.bf16 %v1522_v16, %v1522_v16  ;;  %v1525_v20 = vadd.f32 %v2997_v13, %v1524_v18  ;;  %v3303_v22 = vpop.f32.mrb[43].mxu0 }
0x1254   :  { %v4081_v23 = vpack.c.bf16 %v1525_v20, %v1525_v20  ;;  %1531 = vrot.lane.b32.xlu1 %v4079_v19, %s3637_s24 }
0x1256   :  { %1580 = vrot.lane.b32.xlu0 %v4081_v23, %s3637_s24 }
0x12c6   :  { %v1532_v24 = vpop.permute.xlu1 %1531 }
0x12c7   :  { %v1537_v27 = vsel %vm190_vm2, %v1532_v24, 0 }
0x12c8   :  { %3305 = vmatpush3.bf16.xpose.msra.mxu0 %v1537_v27  ;;  %v1581_v29 = vpop.permute.xlu0 %1580 }
0x12c9   :  { %v1586_v30 = vsel %vm190_vm2, %v1581_v29, 0  ;;  %3316 = vmatprep.subr.bf16.mxu0 %v3635_v15 }
0x12ca   :  { %3311 = vmatpush3.bf16.xpose.msra.mxu1 %v1586_v30 }
0x12cb   :  { %3322 = vmatprep.subr.bf16.mxu1 %v3635_v15 }
0x12cf   :  { %3307 = vmatmul.mubr.msk.bf16.vlgmr.msra.gmra.mrb[44].mxu0 %vm190_vm2, %v4079_v19 }
0x12d0   :  { %3318 = vmatprep.mubr.msk.bf16.mxu0 %vm3636_vm1, %v3635_v15 }
0x12d1   :  { %3313 = vmatmul.mubr.msk.bf16.vlgmr.msra.gmra.mrb[40].mxu1 %vm190_vm2, %v4081_v23 }
0x12d2   :  { %3324 = vmatprep.mubr.msk.bf16.mxu1 %vm3636_vm1, %v3635_v15 }
0x13a2   :  { %v1573_v34 = vpop.f32.mrb[44].mxu0 }
0x13a3   :  { %v1628_v35 = vmul.f32 0.35355338, %v1573_v34  ;;  %v3308_v36 = vpop.f32.mrb[45].mxu0 }
0x13a4   :  { %v1576_v28 = vpop.f32.mrb[46].mxu0  ;;  %v1622_v33 = vpop.f32.mrb[40].mxu1 }
0x13a5   :  { %v1629_v37 = vmul.f32 0.35355338, %v1622_v33  ;;  %v3309_v38 = vpop.f32.mrb[47].mxu0  ;;  %v3314_v40 = vpop.f32.mrb[41].mxu1  ;;  %v1630_v43 = vadd.f32 %v4102_v41, %v1628_v35 }
0x13a6   :  { %v1625_v44 = vpop.f32.mrb[42].mxu1 }
0x13a7   :  { %v3315_v45 = vpop.f32.mrb[43].mxu1  ;;  %v1632_v46 = vsel %vm190_vm2, %v1630_v43, -inf  ;;  %v1631_v49 = vadd.f32 %v4109_v47, %v1629_v37 }
0x13a8   :  { %1633 = vmax.xlane.f32.xlu1 %v1632_v46 }
0x13a9   :  { %v1635_v48 = vsel %vm190_vm2, %v1631_v49, -inf }
0x13aa   :  { %1636 = vmax.xlane.f32.xlu0 %v1635_v48 }
0x13b9   :  { %1656 = vrot.lane.b32.xlu1 %v4079_v19, %s3638_s4 }
0x1435   :  { %v1634_v50 = vpop.xlane.xlu1 %1633 }
0x1436   :  { %v1638_v53 = vsub.f32 %v1630_v43, %v1634_v50 }
0x1437   :  { %v1637_v51 = vpop.xlane.xlu0 %1636 }
0x1438   :  { %v1640_v52 = vmul.f32 1.442695, %v1638_v53  ;;  %v1639_v54 = vsub.f32 %v1631_v49, %v1637_v51 }
0x1439   :  { %v1657_v55 = vpop.permute.xlu1 %1656 }
0x143a   :  { %3563 = vpow2.f32 %v1640_v52  ;;  %v1642_v42 = vmul.f32 1.442695, %v1639_v54  ;;  %v1662_v31 = vsel %vm331_vm3, %v1657_v55, 0 }
0x143b   :  { %3317 = vmatpush3.bf16.msra.mxu0 %v1662_v31 }
0x143c   :  { %3565 = vpow2.f32 %v1642_v42  ;;  %3328 = vmatprep.subr.bf16.mxu0 %v3635_v15 }
0x1444   :  { %v3564_v32 = vpop.eup %3563 }
0x1445   :  { %v1644_v56 = vsel %vm190_vm2, %v3564_v32, 0.0 }
0x1446   :  { %v3566_v21 = vpop.eup %3565  ;;  %1645 = vadd.xlane.f32.xlu1 %v1644_v56 }
0x1447   :  { %v1647_v25 = vsel %vm190_vm2, %v3566_v21, 0.0 }
0x1448   :  { %1648 = vadd.xlane.f32.xlu0 %v1647_v25 }
0x1457   :  { %1754 = vrot.lane.b32.xlu1 %v4079_v19, %s3639_s29 }
0x145b   :  { %1804 = vrot.lane.b32.xlu1 %v4081_v23, %s3639_s29  ;;  %s4424_s29 = smov 48  }
0x145e   :  { %1704 = vrot.lane.b32.xlu0 %v4081_v23, %s3638_s4  ;;  %s4423_s4 = smov 112  }
0x145f   :  { %1752 = vrot.lane.b32.xlu1 %v4079_v19, %s3640_s30 }
0x1462   :  { %1802 = vrot.lane.b32.xlu0 %v4081_v23, %s3640_s30  ;;  %s4425_s30 = smov 72  }
0x14d3   :  { %v1646_v26 = vpop.xlane.xlu1 %1645 }
0x14d4   :  { %3567 = vrcp.f32 %v1646_v26 }
0x14d5   :  { %v1649_v57 = vpop.xlane.xlu0 %1648 }
0x14d6   :  { %3569 = vrcp.f32 %v1649_v57 }
0x14d7   :  { %v1755_v60 = vpop.permute.xlu1 %1754 }
0x14d8   :  { %v1760_v2 = vsel %vm190_vm2, %v1755_v60, 0 }
0x14d9   :  { %v1705_v58 = vpop.permute.xlu0 %1704 }
0x14da   :  { %v1710_v59 = vsel %vm331_vm3, %v1705_v58, 0 }
0x14db   :  { %3323 = vmatpush3.bf16.msra.mxu1 %v1710_v59  ;;  %v1805_v39 = vpop.permute.xlu1 %1804 }
0x14dc   :  { %3334 = vmatprep.subr.bf16.mxu1 %v3635_v15  ;;  %v1810_v4 = vsel %vm190_vm2, %v1805_v39, 0 }
0x14dd   :  { %v1803_v6 = vpop.permute.xlu0 %1802 }
0x14de   :  { %v3568_v61 = vpop.eup %3567 }
0x14df   :  { %v1651_v62 = vmul.f32 %v3568_v61, %v3564_v32  ;;  %v1753_v5 = vpop.permute.xlu1 %1752 }
0x14e0   :  { %v3570_v63 = vpop.eup %3569 }
0x14e1   :  { %v1653_v0 = vmul.f32 %v3570_v63, %v3566_v21  ;;  %v1654_v1 = vpack.c.bf16 %v1651_v62, %v1651_v62 }
0x14e3   :  { %3319 = vmatmul.mubr.msk.bf16.vlgmr.msra.gmra.mrb[48].mxu0 %vm190_vm2, %v1654_v1  ;;  %v1655_v3 = vpack.c.bf16 %v1653_v0, %v1653_v0 }
0x14e4   :  { %3329 = vmatpush3.bf16.xpose.msra.mxu0 %v1760_v2  ;;  %3330 = vmatprep.mubr.msk.bf16.mxu0 %vm3636_vm1, %v3635_v15 }
0x14e5   :  { %3325 = vmatmul.mubr.msk.bf16.vlgmr.msra.gmra.mrb[44].mxu1 %vm190_vm2, %v1655_v3  ;;  %3340 = vmatprep.subr.bf16.mxu0 %v3635_v15 }
0x14e6   :  { %3335 = vmatpush3.bf16.xpose.msra.mxu1 %v1810_v4  ;;  %3336 = vmatprep.mubr.msk.bf16.mxu1 %vm3636_vm1, %v3635_v15 }
0x14e7   :  { %3346 = vmatprep.subr.bf16.mxu1 %v3635_v15 }
0x14eb   :  { %3331 = vmatmul.mubr.msk.bf16.vlgmr.msra.gmra.mrb[52].mxu0 %vm190_vm2, %v1753_v5 }
0x14ec   :  { %3342 = vmatprep.mubr.msk.bf16.mxu0 %vm3636_vm1, %v3635_v15 }
0x14ed   :  { %3337 = vmatmul.mubr.msk.bf16.vlgmr.msra.gmra.mrb[48].mxu1 %vm190_vm2, %v1803_v6 }
0x14ee   :  { %3348 = vmatprep.mubr.msk.bf16.mxu1 %vm3636_vm1, %v3635_v15 }
0x15b6   :  { %v4147_v7 = vpop.f32.mrb[48].mxu0 }
0x15b7   :  { %v3320_v8 = vpop.f32.mrb[49].mxu0 }
0x15b8   :  { %v1701_v9 = vpop.f32.mrb[50].mxu0  ;;  %v4149_v12 = vpop.f32.mrb[44].mxu1 }
0x15b9   :  { %v3321_v13 = vpop.f32.mrb[51].mxu0  ;;  %v3326_v14 = vpop.f32.mrb[45].mxu1 }
0x15ba   :  { %v1749_v16 = vpop.f32.mrb[46].mxu1 }
0x15bb   :  { %v3327_v17 = vpop.f32.mrb[47].mxu1 }
0x15be   :  { %v1796_v18 = vpop.f32.mrb[52].mxu0 }
0x15bf   :  { %v1852_v20 = vmul.f32 0.35355338, %v1796_v18  ;;  %v3332_v22 = vpop.f32.mrb[53].mxu0 }
0x15c0   :  { %v1799_v24 = vpop.f32.mrb[54].mxu0  ;;  %v1846_v27 = vpop.f32.mrb[48].mxu1 }
0x15c1   :  { %v1853_v29 = vmul.f32 0.35355338, %v1846_v27  ;;  %v3333_v30 = vpop.f32.mrb[55].mxu0  ;;  %v3338_v34 = vpop.f32.mrb[49].mxu1  ;;  %v1854_v35 = vadd.f32 %v4102_v41, %v1852_v20 }
0x15c2   :  { %v1849_v36 = vpop.f32.mrb[50].mxu1 }
0x15c3   :  { %v3339_v28 = vpop.f32.mrb[51].mxu1  ;;  %v1856_v33 = vsel %vm190_vm2, %v1854_v35, -inf  ;;  %v1855_v37 = vadd.f32 %v4109_v47, %v1853_v29 }
0x15c4   :  { %1857 = vmax.xlane.f32.xlu1 %v1856_v33 }
0x15c5   :  { %v1859_v38 = vsel %vm190_vm2, %v1855_v37, -inf }
0x15c6   :  { %1860 = vmax.xlane.f32.xlu0 %v1859_v38 }
0x15d5   :  { %1880 = vrot.lane.b32.xlu1 %v4079_v19, %s3641_s0 }
0x15d9   :  { %1978 = vrot.lane.b32.xlu1 %v4079_v19, %s4422_s3 }
0x15dd   :  { %2028 = vrot.lane.b32.xlu1 %v4081_v23, %s4422_s3 }
0x15e1   :  { %1976 = vrot.lane.b32.xlu1 %v4079_v19, %s4423_s4 }
0x1651   :  { %v1858_v40 = vpop.xlane.xlu1 %1857 }
0x1652   :  { %v1862_v43 = vsub.f32 %v1854_v35, %v1858_v40 }
0x1653   :  { %v1861_v44 = vpop.xlane.xlu0 %1860 }
0x1654   :  { %v1864_v45 = vmul.f32 1.442695, %v1862_v43  ;;  %v1863_v46 = vsub.f32 %v1855_v37, %v1861_v44 }
0x1655   :  { %v1881_v49 = vpop.permute.xlu1 %1880 }
0x1656   :  { %3571 = vpow2.f32 %v1864_v45  ;;  %v1866_v48 = vmul.f32 1.442695, %v1863_v46  ;;  %v1886_v50 = vsel %vm331_vm3, %v1881_v49, 0 }
0x1657   :  { %3341 = vmatpush3.bf16.msra.mxu0 %v1886_v50 }
0x1658   :  { %3573 = vpow2.f32 %v1866_v48  ;;  %3352 = vmatprep.subr.bf16.mxu0 %v3635_v15 }
0x1659   :  { %v1979_v21 = vpop.permute.xlu1 %1978 }
0x165a   :  { %v1984_v58 = vsel %vm190_vm2, %v1979_v21, 0 }
0x165d   :  { %v2029_v60 = vpop.permute.xlu1 %2028 }
0x165e   :  { %v2034_v62 = vsel %vm190_vm2, %v2029_v60, 0 }
0x1660   :  { %v3572_v53 = vpop.eup %3571 }
0x1661   :  { %v1868_v51 = vsel %vm190_vm2, %v3572_v53, 0.0  ;;  %v1977_v63 = vpop.permute.xlu1 %1976 }
0x1662   :  { %v3574_v52 = vpop.eup %3573  ;;  %1869 = vadd.xlane.f32.xlu0 %v1868_v51 }
0x1663   :  { %v1871_v54 = vsel %vm190_vm2, %v3574_v52, 0.0 }
0x1666   :  { %1872 = vadd.xlane.f32.xlu0 %v1871_v54 }
0x167c   :  { %1928 = vrot.lane.b32.xlu0 %v4081_v23, %s3641_s0  ;;  %s4426_s0 = smov 104  }
0x1680   :  { %2026 = vrot.lane.b32.xlu0 %v4081_v23, %s4423_s4 }
0x16ef   :  { %v1870_v55 = vpop.xlane.xlu0 %1869 }
0x16f0   :  { %3575 = vrcp.f32 %v1870_v55 }
0x16f3   :  { %v1873_v42 = vpop.xlane.xlu0 %1872 }
0x16f4   :  { %3577 = vrcp.f32 %v1873_v42 }
0x16f7   :  { %v1929_v31 = vpop.permute.xlu0 %1928 }
0x16f8   :  { %v1934_v32 = vsel %vm331_vm3, %v1929_v31, 0 }
0x16f9   :  { %3347 = vmatpush3.bf16.msra.mxu1 %v1934_v32 }
0x16fa   :  { %v3576_v56 = vpop.eup %3575  ;;  %3358 = vmatprep.subr.bf16.mxu1 %v3635_v15 }
0x16fb   :  { %v1875_v25 = vmul.f32 %v3576_v56, %v3572_v53  ;;  %v2027_v0 = vpop.permute.xlu0 %2026 }
0x16fd   :  { %v1878_v26 = vpack.c.bf16 %v1875_v25, %v1875_v25 }
0x16fe   :  { %v3578_v57 = vpop.eup %3577 }
0x16ff   :  { %v1877_v59 = vmul.f32 %v3578_v57, %v3574_v52  ;;  %3343 = vmatmul.mubr.msk.bf16.vlgmr.msra.gmra.mrb[56].mxu0 %vm190_vm2, %v1878_v26 }
0x1700   :  { %3353 = vmatpush3.bf16.xpose.msra.mxu0 %v1984_v58  ;;  %3354 = vmatprep.mubr.msk.bf16.mxu0 %vm3636_vm1, %v3635_v15 }
0x1701   :  { %v1879_v61 = vpack.c.bf16 %v1877_v59, %v1877_v59  ;;  %3364 = vmatprep.subr.bf16.mxu0 %v3635_v15 }
0x1703   :  { %3349 = vmatmul.mubr.msk.bf16.vlgmr.msra.gmra.mrb[52].mxu1 %vm190_vm2, %v1879_v61 }
0x1704   :  { %3359 = vmatpush3.bf16.xpose.msra.mxu1 %v2034_v62  ;;  %3360 = vmatprep.mubr.msk.bf16.mxu1 %vm3636_vm1, %v3635_v15 }
0x1705   :  { %3370 = vmatprep.subr.bf16.mxu1 %v3635_v15 }
0x1707   :  { %3355 = vmatmul.mubr.msk.bf16.vlgmr.msra.gmra.mrb[60].mxu0 %vm190_vm2, %v1977_v63 }
0x1708   :  { %3366 = vmatprep.mubr.msk.bf16.mxu0 %vm3636_vm1, %v3635_v15 }
0x170b   :  { %3361 = vmatmul.mubr.msk.bf16.vlgmr.msra.gmra.mrb[56].mxu1 %vm190_vm2, %v2027_v0 }
0x170c   :  { %3372 = vmatprep.mubr.msk.bf16.mxu1 %vm3636_vm1, %v3635_v15 }
0x17d2   :  { %v4189_v1 = vpop.f32.mrb[56].mxu0 }
0x17d3   :  { %v3344_v39 = vpop.f32.mrb[57].mxu0 }
0x17d4   :  { %v1925_v2 = vpop.f32.mrb[58].mxu0 }
0x17d5   :  { %v3345_v3 = vpop.f32.mrb[59].mxu0 }
0x17d6   :  { %v4191_v4 = vpop.f32.mrb[52].mxu1 }
0x17d7   :  { %v3476_v5 = vpack.i.bf16 %v4191_v4, %v4189_v1  ;;  %v3350_v6 = vpop.f32.mrb[53].mxu1 }
0x17d8   :  { %v1973_v8 = vpop.f32.mrb[54].mxu1 }
0x17d9   :  { %v3351_v9 = vpop.f32.mrb[55].mxu1 }
0x17da   :  { %v2020_v13 = vpop.f32.mrb[60].mxu0 }
0x17db   :  { %v2076_v14 = vmul.f32 0.35355338, %v2020_v13  ;;  %v3356_v16 = vpop.f32.mrb[61].mxu0 }
0x17dc   :  { %v2023_v17 = vpop.f32.mrb[62].mxu0 }
0x17dd   :  { %v3357_v18 = vpop.f32.mrb[63].mxu0  ;;  %v2078_v20 = vadd.f32 %v4102_v41, %v2076_v14 }
0x17de   :  { %v2070_v22 = vpop.f32.mrb[56].mxu1 }
0x17df   :  { %v2077_v24 = vmul.f32 0.35355338, %v2070_v22  ;;  %v3362_v27 = vpop.f32.mrb[57].mxu1  ;;  %v2080_v29 = vsel %vm190_vm2, %v2078_v20, -inf }
0x17e0   :  { %v2073_v30 = vpop.f32.mrb[58].mxu1  ;;  %2081 = vmax.xlane.f32.xlu1 %v2080_v29 }
0x17e1   :  { %v3363_v34 = vpop.f32.mrb[59].mxu1  ;;  %v2079_v35 = vadd.f32 %v4109_v47, %v2077_v24 }
0x17e3   :  { %v2083_v36 = vsel %vm190_vm2, %v2079_v35, -inf }
0x17e4   :  { %2084 = vmax.xlane.f32.xlu0 %v2083_v36 }
0x17f1   :  { %2104 = vrot.lane.b32.xlu1 %v4079_v19, %s4424_s29 }
0x17f5   :  { %2202 = vrot.lane.b32.xlu1 %v4079_v19, %s4425_s30 }
0x17f9   :  { %2252 = vrot.lane.b32.xlu1 %v4081_v23, %s4425_s30 }
0x17fd   :  { %2200 = vrot.lane.b32.xlu1 %v4079_v19, %s4426_s0 }
0x186d   :  { %v2082_v28 = vpop.xlane.xlu1 %2081 }
0x186e   :  { %v2086_v33 = vsub.f32 %v2078_v20, %v2082_v28 }
0x1870   :  { %v2088_v37 = vmul.f32 1.442695, %v2086_v33 }
0x1871   :  { %v2085_v38 = vpop.xlane.xlu0 %2084  ;;  %v2105_v40 = vpop.permute.xlu1 %2104 }
0x1872   :  { %3579 = vpow2.f32 %v2088_v37  ;;  %v2087_v43 = vsub.f32 %v2079_v35, %v2085_v38  ;;  %v2110_v44 = vsel %vm331_vm3, %v2105_v40, 0 }
0x1873   :  { %3365 = vmatpush3.bf16.msra.mxu0 %v2110_v44 }
0x1874   :  { %v2090_v45 = vmul.f32 1.442695, %v2087_v43  ;;  %3376 = vmatprep.subr.bf16.mxu0 %v3635_v15 }
0x1875   :  { %v2203_v42 = vpop.permute.xlu1 %2202 }
0x1876   :  { %3581 = vpow2.f32 %v2090_v45  ;;  %v2208_v21 = vsel %vm190_vm2, %v2203_v42, 0 }
0x1879   :  { %v2253_v26 = vpop.permute.xlu1 %2252 }
0x187a   :  { %v2258_v58 = vsel %vm190_vm2, %v2253_v26, 0 }
0x187c   :  { %v3580_v46 = vpop.eup %3579 }
0x187d   :  { %v2092_v49 = vsel %vm190_vm2, %v3580_v46, 0.0  ;;  %v2201_v59 = vpop.permute.xlu1 %2200 }
0x187e   :  { %2093 = vadd.xlane.f32.xlu0 %v2092_v49 }
0x1880   :  { %v3582_v48 = vpop.eup %3581 }
0x1881   :  { %v2095_v50 = vsel %vm190_vm2, %v3582_v48, 0.0 }
0x1882   :  { %2096 = vadd.xlane.f32.xlu0 %v2095_v50 }
0x1898   :  { %2152 = vrot.lane.b32.xlu0 %v4081_v23, %s4424_s29 }
0x189c   :  { %2250 = vrot.lane.b32.xlu0 %v4081_v23, %s4426_s0 }
0x190b   :  { %v2094_v53 = vpop.xlane.xlu0 %2093 }
0x190c   :  { %3583 = vrcp.f32 %v2094_v53 }
0x190f   :  { %v2097_v51 = vpop.xlane.xlu0 %2096 }
0x1910   :  { %3585 = vrcp.f32 %v2097_v51 }
0x1913   :  { %v2153_v52 = vpop.permute.xlu0 %2152 }
0x1914   :  { %v2158_v54 = vsel %vm331_vm3, %v2153_v52, 0  ;;  %v3503_v52 = vld [vmem:[%s4379_s6 + $0x10] sm:$0xff]  }
0x1915   :  { %3371 = vmatpush3.bf16.msra.mxu1 %v2158_v54  ;;  %v3504_v54 = vld [vmem:[%s4379_s6 + $0x18] sm:$0xff]  }
0x1916   :  { %v3584_v55 = vpop.eup %3583  ;;  %3382 = vmatprep.subr.bf16.mxu1 %v3635_v15 }
0x1917   :  { %v2099_v31 = vmul.f32 %v3584_v55, %v3580_v46  ;;  %v2251_v60 = vpop.permute.xlu0 %2250 }
0x1919   :  { %v2102_v32 = vpack.c.bf16 %v2099_v31, %v2099_v31 }
0x191a   :  { %v3586_v56 = vpop.eup %3585 }
0x191b   :  { %v2101_v25 = vmul.f32 %v3586_v56, %v3582_v48  ;;  %3367 = vmatmul.mubr.msk.bf16.vlgmr.msra.gmra.mrb[64].mxu0 %vm190_vm2, %v2102_v32 }
0x191c   :  { %3377 = vmatpush3.bf16.xpose.msra.mxu0 %v2208_v21  ;;  %3378 = vmatprep.mubr.msk.bf16.mxu0 %vm3636_vm1, %v3635_v15 }
0x191d   :  { %v2103_v57 = vpack.c.bf16 %v2101_v25, %v2101_v25  ;;  %3388 = vmatprep.subr.bf16.mxu0 %v3635_v15 }
0x191f   :  { %3373 = vmatmul.mubr.msk.bf16.vlgmr.msra.gmra.mrb[60].mxu1 %vm190_vm2, %v2103_v57 }
0x1920   :  { %3383 = vmatpush3.bf16.xpose.msra.mxu1 %v2258_v58  ;;  %3384 = vmatprep.mubr.msk.bf16.mxu1 %vm3636_vm1, %v3635_v15 }
0x1921   :  { %3394 = vmatprep.subr.bf16.mxu1 %v3635_v15 }
0x1923   :  { %3379 = vmatmul.mubr.msk.bf16.vlgmr.msra.gmra.mrb[68].mxu0 %vm190_vm2, %v2201_v59 }
0x1924   :  { %3390 = vmatprep.mubr.msk.bf16.mxu0 %vm3636_vm1, %v3635_v15 }
0x1927   :  { %3385 = vmatmul.mubr.msk.bf16.vlgmr.msra.gmra.mrb[64].mxu1 %vm190_vm2, %v2251_v60 }
0x1928   :  { %3396 = vmatprep.mubr.msk.bf16.mxu1 %vm3636_vm1, %v3635_v15 }
0x19ee   :  { %v2146_v61 = vpop.f32.mrb[64].mxu0 }
0x19ef   :  { %v3368_v62 = vpop.f32.mrb[65].mxu0 }
0x19f0   :  { %v2149_v63 = vpop.f32.mrb[66].mxu0 }
0x19f1   :  { %v3369_v0 = vpop.f32.mrb[67].mxu0 }
0x19f2   :  { %v2194_v39 = vpop.f32.mrb[60].mxu1 }
0x19f3   :  { %v3481_v2 = vpack.i.bf16 %v2194_v39, %v2146_v61  ;;  %v3374_v3 = vpop.f32.mrb[61].mxu1 }
0x19f4   :  { %v2197_v6 = vpop.f32.mrb[62].mxu1 }
0x19f5   :  { %v3375_v8 = vpop.f32.mrb[63].mxu1 }
0x19f6   :  { %v2244_v9 = vpop.f32.mrb[68].mxu0 }
0x19f7   :  { %v2300_v13 = vmul.f32 0.35355338, %v2244_v9  ;;  %v3380_v14 = vpop.f32.mrb[69].mxu0 }
0x19f8   :  { %v2247_v16 = vpop.f32.mrb[70].mxu0 }
0x19f9   :  { %v3381_v17 = vpop.f32.mrb[71].mxu0  ;;  %v2302_v18 = vadd.f32 %v4102_v41, %v2300_v13 }
0x19fa   :  { %v2294_v20 = vpop.f32.mrb[64].mxu1 }
0x19fb   :  { %v2301_v22 = vmul.f32 0.35355338, %v2294_v20  ;;  %v3386_v24 = vpop.f32.mrb[65].mxu1  ;;  %v2304_v27 = vsel %vm190_vm2, %v2302_v18, -inf }
0x19fc   :  { %v2297_v29 = vpop.f32.mrb[66].mxu1  ;;  %2305 = vmax.xlane.f32.xlu1 %v2304_v27 }
0x19fd   :  { %v3387_v30 = vpop.f32.mrb[67].mxu1  ;;  %v2303_v34 = vadd.f32 %v4109_v47, %v2301_v22 }
0x19ff   :  { %v2307_v35 = vsel %vm190_vm2, %v2303_v34, -inf }
0x1a00   :  { %2308 = vmax.xlane.f32.xlu0 %v2307_v35 }
0x1a0d   :  { %2328 = vrot.lane.b32.xlu1 %v4079_v19, %s4427_s25 }
0x1a11   :  { %3477 = vrot.lane.b32.xlu1 %v3476_v5, %s4428_s22 }
0x1a15   :  { %3482 = vrot.lane.b32.xlu1 %v3481_v2, %s4429_s23 }
0x1a89   :  { %v2306_v41 = vpop.xlane.xlu1 %2305 }
0x1a8a   :  { %v2310_v36 = vsub.f32 %v2302_v18, %v2306_v41 }
0x1a8c   :  { %v2312_v28 = vmul.f32 1.442695, %v2310_v36 }
0x1a8d   :  { %v2309_v33 = vpop.xlane.xlu0 %2308  ;;  %v2329_v37 = vpop.permute.xlu1 %2328 }
0x1a8e   :  { %3587 = vpow2.f32 %v2312_v28  ;;  %v2311_v47 = vsub.f32 %v2303_v34, %v2309_v33  ;;  %v2334_v38 = vsel %vm331_vm3, %v2329_v37, 0 }
0x1a8f   :  { %3389 = vmatpush3.bf16.msra.mxu0 %v2334_v38 }
0x1a90   :  { %v2314_v40 = vmul.f32 1.442695, %v2311_v47  ;;  %3400 = vmatprep.subr.bf16.mxu0 %v3635_v15 }
0x1a91   :  { %v3478_v58 = vpop.permute.xlu1 %3477 }
0x1a92   :  { %3589 = vpow2.f32 %v2314_v40  ;;  %v3480_v60 = vunpack.i.h.bf16 %v3478_v58  ;;  %v3479_v61 = vunpack.i.l.bf16 %v3478_v58 }
0x1a94   :  { %v2449_v39 = vsel %vm190_vm2, %v4149_v12, %v3480_v60  ;;  %v2448_v2 = vsel %vm190_vm2, %v4147_v7, %v3479_v61  ;;  %v3022_v7 = vld [vmem:[%s4380_s7 + $0x1] ss:$0 sm:$0xff] }
0x1a95   :  { %v3483_v59 = vpop.permute.xlu1 %3482 }
0x1a96   :  { %v3485_v62 = vunpack.i.h.bf16 %v3483_v59  ;;  %v3484_v63 = vunpack.i.l.bf16 %v3483_v59 }
0x1a98   :  { %v3588_v19 = vpop.eup %3587  ;;  %v2450_v8 = vsel %vm1121_vm4, %v2448_v2, %v3484_v63  ;;  %v2451_v9 = vsel %vm1121_vm4, %v2449_v39, %v3485_v62 }
0x1a99   :  { %v2316_v1 = vsel %vm190_vm2, %v3588_v19, 0.0 }
0x1a9a   :  { %2317 = vadd.xlane.f32.xlu0 %v2316_v1 }
0x1a9c   :  { %v3590_v4 = vpop.eup %3589 }
0x1a9d   :  { %v2319_v5 = vsel %vm190_vm2, %v3590_v4, 0.0 }
0x1a9e   :  { %2320 = vadd.xlane.f32.xlu0 %v2319_v5 }
0x1ab4   :  { %2376 = vrot.lane.b32.xlu0 %v4081_v23, %s4427_s25 }
0x1b27   :  { %v2318_v43 = vpop.xlane.xlu0 %2317 }
0x1b28   :  { %3591 = vrcp.f32 %v2318_v43 }
0x1b2b   :  { %v2321_v44 = vpop.xlane.xlu0 %2320 }
0x1b2c   :  { %3593 = vrcp.f32 %v2321_v44 }
0x1b2f   :  { %v2377_v45 = vpop.permute.xlu0 %2376 }
0x1b30   :  { %v2382_v46 = vsel %vm331_vm3, %v2377_v45, 0 }
0x1b31   :  { %3395 = vmatpush3.bf16.msra.mxu1 %v2382_v46 }
0x1b32   :  { %v3592_v49 = vpop.eup %3591  ;;  %3408 = vmatprep.subr.bf16.mxu1 %v3635_v15 }
0x1b33   :  { %v2323_v48 = vmul.f32 %v3592_v49, %v3588_v19  ;;  %v3506_v19 = vld [vmem:[%s4383_s10 + $0x18] sm:$0xff]  }
0x1b35   :  { %v2326_v50 = vpack.c.bf16 %v2323_v48, %v2323_v48  ;;  %v3028_v48 = vld [vmem:[%s4381_s8 + $0x1] ss:$0 sm:$0xff] }
0x1b36   :  { %v3594_v53 = vpop.eup %3593 }
0x1b37   :  { %v2325_v51 = vmul.f32 %v3594_v53, %v3590_v4  ;;  %3391 = vmatmul.mubr.msk.bf16.vlgmr.msra.gmra.mrb[72].mxu0 %vm190_vm2, %v2326_v50 }
0x1b38   :  { %3404 = vmatprep.mubr.msk.bf16.mxu0 %vm3636_vm1, %v3635_v15  ;;  %3401 = vmatpush3.bf16.msra.mxu0 %v3503_v52 }
0x1b39   :  { %v2327_v23 = vpack.c.bf16 %v2325_v51, %v2325_v51  ;;  %3402 = vmatprep.subr.bf16.mxu0 %v3635_v15 }
0x1b3b   :  { %3397 = vmatmul.mubr.msk.bf16.vlgmr.msra.gmra.mrb[68].mxu1 %vm190_vm2, %v2327_v23  ;;  %v3029_v23 = vld [vmem:[%s4382_s9 + $0x1] ss:$0 sm:$0xff] }
0x1b3c   :  { %3412 = vmatprep.mubr.msk.bf16.mxu1 %vm3636_vm1, %v3635_v15  ;;  %3403 = vmatpush3.bf16.msra.mxu0 %v3504_v54 }
0x1b3d   :  { %3416 = vmatprep.subr.bf16.mxu0 %v3635_v15 }
0x1c0a   :  { %v2370_v55 = vpop.f32.mrb[72].mxu0 }
0x1c0b   :  { %v3392_v42 = vpop.f32.mrb[73].mxu0 }
0x1c0c   :  { %v2373_v31 = vpop.f32.mrb[74].mxu0 }
0x1c0d   :  { %v3393_v32 = vpop.f32.mrb[75].mxu0  ;;  %v3507_v31 = vld [vmem:[%s4385_s12 + $0x20] sm:$0xff]  }
0x1c0e   :  { %v2418_v56 = vpop.f32.mrb[68].mxu1  ;;  %v3508_v32 = vld [vmem:[%s4385_s12 + $0x28] sm:$0xff]  }
0x1c0f   :  { %v3486_v21 = vpack.i.bf16 %v2418_v56, %v2370_v55  ;;  %v3398_v25 = vpop.f32.mrb[69].mxu1  ;;  %v3509_v56 = vld [vmem:[%s4385_s12 + $0x30] sm:$0xff]  }
0x1c10   :  { %v2421_v26 = vpop.f32.mrb[70].mxu1  ;;  %v3035_v25 = vld [vmem:[%s4384_s11 + $0x1] ss:$0 sm:$0xff] }
0x1c11   :  { %v3399_v57 = vpop.f32.mrb[71].mxu1  ;;  %3487 = vrot.lane.b32.xlu1 %v3486_v21, %s4430_s5  ;;  %v3510_v21 = vld [vmem:[%s4385_s12 + $0x38] sm:$0xff]  }
0x1c83   :  { %v3488_v0 = vpop.permute.xlu1 %3487 }
0x1c84   :  { %v3490_v3 = vunpack.i.h.bf16 %v3488_v0  ;;  %v3489_v6 = vunpack.i.l.bf16 %v3488_v0 }
0x1c86   :  { %v2453_v13 = vsel %vm1124_vm5, %v2451_v9, %v3490_v3  ;;  %v2452_v14 = vsel %vm1124_vm5, %v2450_v8, %v3489_v6 }
0x1c87   :  { %v2459_v16 = vpack.c.bf16 %v2453_v13, %v2452_v14 }
0x1c89   :  { %3405 = vmatmul.mubr.msk.bf16.vlgmr.msra.gmra.mrb[76].mxu0 %vm71_vm0, %v2459_v16 }
0x1c8a   :  { %3424 = vmatprep.mubr.msk.bf16.mxu0 %vm3636_vm1, %v3635_v15  ;;  %3417 = vmatpush3.bf16.msra.mxu0 %v3507_v31 }
0x1c8b   :  { %3418 = vmatprep.subr.bf16.mxu0 %v3635_v15 }
0x1c8e   :  { %3419 = vmatpush3.bf16.msra.mxu0 %v3508_v32 }
0x1c8f   :  { %3420 = vmatprep.subr.bf16.mxu0 %v3635_v15 }
0x1c92   :  { %3421 = vmatpush3.bf16.msra.mxu0 %v3509_v56 }
0x1c93   :  { %3422 = vmatprep.subr.bf16.mxu0 %v3635_v15 }
0x1c96   :  { %3423 = vmatpush3.bf16.msra.mxu0 %v3510_v21  ;;  %v3057_v21 = vld [vmem:[%s4388_s15 + $0x1] ss:$0 sm:$0xff] }
0x1d5c   :  { %v2517_v12 = vpop.f32.mrb[76].mxu0 }
0x1d5d   :  { %v2518_v17 = vadd.f32 %v3022_v7, %v2517_v12  ;;  %v3406_v18 = vpop.f32.mrb[77].mxu0 }
0x1d5e   :  { %v2520_v20 = vpop.f32.mrb[78].mxu0 }
0x1d5f   :  { %v2521_v22 = vadd.f32 %v3022_v7, %v2520_v20  ;;  %v3407_v24 = vpop.f32.mrb[79].mxu0  ;;  %v2524_v27 = vadd.f32 %v2518_v17, %v4067_v10 }
0x1d61   :  { %v2530_v29 = vsel %vm71_vm0, %v2524_v27, 0.0  ;;  %v2525_v30 = vadd.f32 %v2521_v22, %v4069_v11  ;;  %v3505_v11 = vld [vmem:[%s4383_s10 + $0x10] sm:$0xff]  }
0x1d62   :  { %2531 = vadd.xlane.f32.xlu0 %v2530_v29  ;;  %3409 = vmatpush3.bf16.msra.mxu1 %v3505_v11 }
0x1d63   :  { %v2533_v34 = vsel %vm71_vm0, %v2525_v30, 0.0  ;;  %3410 = vmatprep.subr.bf16.mxu1 %v3635_v15 }
0x1d64   :  { %2534 = vadd.xlane.f32.xlu1 %v2533_v34 }
0x1d66   :  { %3411 = vmatpush3.bf16.msra.mxu1 %v3506_v19 }
0x1d67   :  { %3428 = vmatprep.subr.bf16.mxu1 %v3635_v15 }
0x1def   :  { %v2532_v35 = vpop.xlane.xlu0 %2531 }
0x1df0   :  { %v2536_v41 = vmul.f32 0.03125, %v2532_v35 }
0x1df1   :  { %v2535_v36 = vpop.xlane.xlu1 %2534 }
0x1df2   :  { %v2538_v28 = vsub.f32 %v2524_v27, %v2536_v41  ;;  %v2537_v33 = vmul.f32 0.03125, %v2535_v36  ;;  %v3048_v27 = vld [vmem:[%s4386_s13 + $0x1] ss:$0 sm:$0xff] }
0x1df4   :  { %v2539_v37 = vsub.f32 %v2525_v30, %v2537_v33  ;;  %v2540_v47 = vmul.f32 %v2538_v28, %v2538_v28 }
0x1df6   :  { %v2542_v38 = vsel %vm71_vm0, %v2540_v47, 0.0  ;;  %v2541_v40 = vmul.f32 %v2539_v37, %v2539_v37 }
0x1df7   :  { %2543 = vadd.xlane.f32.xlu0 %v2542_v38 }
0x1df8   :  { %v2545_v10 = vsel %vm71_vm0, %v2541_v40, 0.0 }
0x1dfb   :  { %2546 = vadd.xlane.f32.xlu0 %v2545_v10 }
0x1e84   :  { %v2544_v1 = vpop.xlane.xlu0 %2543 }
0x1e85   :  { %v2548_v4 = vmul.f32 0.03125, %v2544_v1 }
0x1e87   :  { %v2550_v5 = vadd.f32 1e-12, %v2548_v4 }
0x1e88   :  { %v2547_v43 = vpop.xlane.xlu0 %2546 }
0x1e89   :  { %3595 = vrsqrt.f32 %v2550_v5  ;;  %v2549_v44 = vmul.f32 0.03125, %v2547_v43 }
0x1e8b   :  { %v2551_v45 = vadd.f32 1e-12, %v2549_v44 }
0x1e8d   :  { %3597 = vrsqrt.f32 %v2551_v45  ;;  %v3511_v45 = vld [vmem:[%s4389_s16] sm:$0xff]  }
0x1e93   :  { %v3596_v46 = vpop.eup %3595 }
0x1e94   :  { %v2554_v49 = vmul.f32 %v3596_v46, %v2538_v28  ;;  %v3512_v46 = vld [vmem:[%s4389_s16 + $0x8] sm:$0xff]  }
0x1e96   :  { %v2562_v53 = vmul.f32 %v3028_v48, %v2554_v49 }
0x1e97   :  { %v3598_v50 = vpop.eup %3597 }
0x1e98   :  { %v2555_v51 = vmul.f32 %v3598_v50, %v2539_v37  ;;  %v2570_v54 = vadd.f32 %v3029_v23, %v2562_v53 }
0x1e9a   :  { %v2563_v52 = vmul.f32 %v3028_v48, %v2555_v51 }
0x1e9c   :  { %v2571_v55 = vadd.f32 %v3029_v23, %v2563_v52 }
0x1e9e   :  { %v2577_v42 = vpack.c.bf16 %v2571_v55, %v2570_v54 }
0x1ea0   :  { %3413 = vmatmul.mubr.msk.bf16.vlgmr.msra.gmra.mrb[72].mxu1 %vm71_vm0, %v2577_v42  ;;  %v3056_v42 = vld [vmem:[%s4387_s14 + $0x1] ss:$0 sm:$0xff] }
0x1ea1   :  { %3432 = vmatprep.mubr.msk.bf16.mxu1 %vm3636_vm1, %v3635_v15  ;;  %3429 = vmatpush3.bf16.msra.mxu1 %v3511_v45 }
0x1ea2   :  { %3430 = vmatprep.subr.bf16.mxu1 %v3635_v15 }
0x1ea5   :  { %3431 = vmatpush3.bf16.msra.mxu1 %v3512_v46 }
0x1ea6   :  { %3436 = vmatprep.subr.bf16.mxu1 %v3635_v15 }
0x1f73   :  { %v2635_v26 = vpop.f32.mrb[72].mxu1 }
0x1f74   :  { %v2636_v57 = vadd.f32 %v3035_v25, %v2635_v26  ;;  %v3414_v58 = vpop.f32.mrb[73].mxu1 }
0x1f75   :  { %v2638_v59 = vpop.f32.mrb[74].mxu1 }
0x1f76   :  { %v2644_v60 = vmul.f32 0.044715, %v2636_v57  ;;  %v2639_v61 = vadd.f32 %v3035_v25, %v2638_v59  ;;  %v3415_v62 = vpop.f32.mrb[75].mxu1  ;;  %v2642_v12 = vmul.f32 0.5, %v2636_v57 }
0x1f77   :  { %v3058_v62 = vld [vmem:[%s4390_s17] ss:$0 sm:$0xff] }
0x1f78   :  { %v2646_v63 = vmul.f32 %v2644_v60, %v2636_v57  ;;  %v2645_v0 = vmul.f32 0.044715, %v2639_v61  ;;  %v2643_v17 = vmul.f32 0.5, %v2639_v61  ;;  %v3513_v60 = vld [vmem:[%s4391_s18] sm:$0xff]  }
0x1f7a   :  { %v2648_v39 = vmul.f32 %v2646_v63, %v2636_v57  ;;  %v2647_v2 = vmul.f32 %v2645_v0, %v2639_v61 }
0x1f7c   :  { %v2650_v3 = vadd.f32 %v2648_v39, %v2636_v57  ;;  %v2649_v6 = vmul.f32 %v2647_v2, %v2639_v61 }
0x1f7e   :  { %v2652_v8 = vmul.f32 0.7978846, %v2650_v3  ;;  %v2651_v9 = vadd.f32 %v2649_v6, %v2639_v61  ;;  %v3514_v61 = vld [vmem:[%s4391_s18 + $0x8] sm:$0xff]   ;;  %s3651_s18 = smov [#allocation2]  }
0x1f7f   :  { %s2942_s25 = sshll.u32 %s3651_s18, 4  ;;  %s2943_s25 = int_to_ptr.vmem [resolvable:$true] %s2942_s25 }
0x1f80   :  { %3599 = vtanh.f32 %v2652_v8  ;;  %v2653_v13 = vmul.f32 0.7978846, %v2651_v9  ;;  %s3611_s17 = scalar_lea.vmem %s2943_s25, 32  ;;  %p3616_p1 = scmp.lt.s32.totalorder %s2943_s25, %s2943_s25 }
0x1f81   :  { %p3612_p0 = scmp.ne.s32.totalorder %s2943_s25, %s3611_s17  ;;  %p3617_p2 = scmp.lt.s32.totalorder %s3611_s17, %s3611_s17 }
0x1f82   :  { %3601 = vtanh.f32 %v2653_v13 }
0x1f83   :  { %p3618_p3 = por %p3617_p2, %p3616_p1 }
0x1f85   :  { %p3619_p4 = pnand %p3618_p3, %p3612_p0 }
0x1f8a   :  { %v3600_v14 = vpop.eup %3599 }
0x1f8b   :  { %v2656_v16 = vadd.f32 1.0, %v3600_v14 }
0x1f8c   :  { %v3602_v7 = vpop.eup %3601 }
0x1f8d   :  { %v2657_v18 = vadd.f32 1.0, %v3602_v7  ;;  %v2658_v20 = vmul.f32 %v2656_v16, %v2642_v12 }
0x1f8f   :  { %v2659_v22 = vmul.f32 %v2657_v18, %v2643_v17 }
0x1f91   :  { %v2669_v24 = vpack.c.bf16 %v2659_v22, %v2658_v20 }
0x1f93   :  { %3425 = vmatmul.mubr.msk.bf16.vlgmr.msra.gmra.mrb[80].mxu0 %vm1367_vm6, %v2669_v24 }
0x2066   :  { %v2739_v29 = vpop.f32.mrb[80].mxu0 }
0x2067   :  { %v2740_v30 = vadd.f32 %v3048_v27, %v2739_v29  ;;  %v3426_v34 = vpop.f32.mrb[81].mxu0 }
0x2068   :  { %v2742_v35 = vpop.f32.mrb[82].mxu0 }
0x2069   :  { %v2746_v41 = vadd.f32 %v2740_v30, %v2570_v54  ;;  %v2743_v36 = vadd.f32 %v3048_v27, %v2742_v35  ;;  %v3427_v28 = vpop.f32.mrb[83].mxu0 }
0x206b   :  { %v2747_v33 = vadd.f32 %v2743_v36, %v2571_v55  ;;  %v2752_v37 = vsel %vm71_vm0, %v2746_v41, 0.0 }
0x206c   :  { %2753 = vadd.xlane.f32.xlu1 %v2752_v37 }
0x206d   :  { %v2755_v47 = vsel %vm71_vm0, %v2747_v33, 0.0 }
0x206e   :  { %2756 = vadd.xlane.f32.xlu0 %v2755_v47 }
0x20f9   :  { %v2754_v38 = vpop.xlane.xlu1 %2753 }
0x20fa   :  { %v2758_v40 = vmul.f32 0.03125, %v2754_v38 }
0x20fb   :  { %v2757_v10 = vpop.xlane.xlu0 %2756 }
0x20fc   :  { %v2760_v11 = vsub.f32 %v2746_v41, %v2758_v40  ;;  %v2759_v19 = vmul.f32 0.03125, %v2757_v10 }
0x20fe   :  { %v2761_v1 = vsub.f32 %v2747_v33, %v2759_v19  ;;  %v2762_v4 = vmul.f32 %v2760_v11, %v2760_v11 }
0x2100   :  { %v2764_v5 = vsel %vm71_vm0, %v2762_v4, 0.0  ;;  %v2763_v43 = vmul.f32 %v2761_v1, %v2761_v1 }
0x2101   :  { %2765 = vadd.xlane.f32.xlu1 %v2764_v5 }
0x2102   :  { %v2767_v44 = vsel %vm71_vm0, %v2763_v43, 0.0 }
0x2103   :  { %2768 = vadd.xlane.f32.xlu0 %v2767_v44 }
0x218e   :  { %v2766_v49 = vpop.xlane.xlu1 %2765 }
0x218f   :  { %v2770_v48 = vmul.f32 0.03125, %v2766_v49 }
0x2190   :  { %v2769_v50 = vpop.xlane.xlu0 %2768 }
0x2191   :  { %v2772_v53 = vadd.f32 1e-12, %v2770_v48  ;;  %v2771_v51 = vmul.f32 0.03125, %v2769_v50 }
0x2193   :  { %3603 = vrsqrt.f32 %v2772_v53  ;;  %v2773_v23 = vadd.f32 1e-12, %v2771_v51 }
0x2195   :  { %3605 = vrsqrt.f32 %v2773_v23 }
0x219d   :  { %v3604_v52 = vpop.eup %3603 }
0x219e   :  { %v2776_v54 = vmul.f32 %v3604_v52, %v2760_v11 }
0x219f   :  { %v3606_v55 = vpop.eup %3605 }
0x21a0   :  { %v2777_v31 = vmul.f32 %v3606_v55, %v2761_v1  ;;  %v2784_v32 = vmul.f32 %v3056_v42, %v2776_v54 }
0x21a2   :  { %v2785_v56 = vmul.f32 %v3056_v42, %v2777_v31  ;;  %v2792_v26 = vadd.f32 %v3057_v21, %v2784_v32 }
0x21a4   :  { %v2793_v25 = vadd.f32 %v3057_v21, %v2785_v56 }
0x21a6   :  { %v2795_v57 = vrot.slane %v2793_v25, 7 }
0x21a8   :  { %v2798_v58 = vsel %vm2797_vm7, %v2792_v26, %v2795_v57 }
0x21a9   :  { %v2803_v59 = vpack.c.bf16 %v2798_v58, %v2798_v58 }
0x21ab   :  { %3433 = vmatmul.mubr.msk.bf16.vlgmr.msra.gmra.mrb[76].mxu1 %vm71_vm0, %v2803_v59 }
0x21ac   :  { %3440 = vmatprep.mubr.msk.bf16.mxu1 %vm3636_vm1, %v3635_v15  ;;  %3437 = vmatpush3.bf16.msra.mxu1 %v3513_v60 }
0x21ad   :  { %3438 = vmatprep.subr.bf16.mxu1 %v3635_v15  ;;  %v3062_v15 = vld [vmem:[%s4392_s19] ss:$0 sm:$0xff] }
0x21b0   :  { %3439 = vmatpush3.bf16.msra.mxu1 %v3514_v61 }
0x227e   :  { %v2860_v63 = vpop.f32.mrb[76].mxu1 }
0x227f   :  { %v2861_v0 = vadd.f32 %v3058_v62, %v2860_v63  ;;  %v3434_v39 = vpop.f32.mrb[77].mxu1 }
0x2280   :  { %v2863_v2 = vpop.f32.mrb[78].mxu1 }
0x2281   :  { %3607 = vtanh.f32 %v2861_v0  ;;  %v3435_v3 = vpop.f32.mrb[79].mxu1 }
0x228b   :  { %v3608_v6 = vpop.eup %3607 }
0x228c   :  { %v2871_v8 = vpack.c.bf16 %v3608_v6, %v3608_v6 }
0x228e   :  { %3441 = vmatmul.mubr.msk.bf16.vlgmr.msra.gmra.mrb[80].mxu1 %vm71_vm0, %v2871_v8 }
0x2361   :  { %v2928_v9 = vpop.f32.mrb[80].mxu1 }
0x2362   :  { %v2929_v13 = vadd.f32 %v3062_v15, %v2928_v9  ;;  %v3442_v14 = vpop.f32.mrb[81].mxu1 }
0x2363   :  { %v2931_v16 = vpop.f32.mrb[82].mxu1 }
0x2364   :  { %v3443_v7 = vpop.f32.mrb[83].mxu1  ;;  %2935 = vst.msk [vmem:[#allocation2] sm:$0x3] %vm2934_vm8, %v2929_v13 }
0x2365   :  { %3622 = shalt.err (!%p3619_p4)
}
0x2366   :  { %s3623_s19 = scalar_lea.hbm %s4393_s20, 32 }
0x2367   :  { %p3624_p5 = scmp.ne.s32.totalorder %s4393_s20, %s3623_s19  ;;  %p3627_p6 = scmp.lt.u32.totalorder %s3623_s19, %s4393_s20 }
0x2369   :  { %p3629_p7 = pnand %p3627_p6, %p3624_p5 }
0x236b   :  { %3632 = shalt.err (!%p3629_p7)
}
0x236c   :  { %2945 = dma.vmem_to_hbm [thread:$0]  %s2943_s25, 32, %s4393_s20, [#allocation3]  }
0x236d   :  { %3633 = dma.done.wait [#allocation3], 32  }
0x236e   :  { %3634 = vsyncadd [#allocation3], 4294967264 }
0x236f   :  { %2949 = vsyncpa [#allocation3], 1 }

</bundles_post_ra>
